<compile_context>
chip_gen: v7x
topology: tpu7x:2x2x1
jax: 0.10.0
libtpu: 0.0.40
codegen_flags: <defaults>
</compile_context>

<pallas_src>
import functools

import jax
import jax.numpy as jnp
from jax.experimental import pallas as pl
from jax.experimental.pallas import tpu as pltpu


def _round_up(x, m):
    return ((x + m - 1) // m) * m


def _choose_tile(dim, align, max_tile):
    """Return (tile, padded_dim).

    Prefers padding `dim` up over shrinking the tile: minimise the number of
    grid steps first (per-step overhead, MXU feed width), then minimise the
    amount of zero padding among tiles with that step count.
    """
    p = _round_up(dim, align)
    if p <= max_tile:
        return p, p
    best_t = best_pad = best_steps = None
    t = max_tile
    while t >= 2 * align:
        pad = _round_up(p, t)
        steps = pad // t
        if (best_t is None or steps < best_steps
                or (steps == best_steps and pad < best_pad)):
            best_t, best_pad, best_steps = t, pad, steps
        t -= align
    return best_t, best_pad


_TM_MAX, _TK_MAX, _TN_MAX = 512, 512, 512
_VMEM_LIMIT = 48 * 1024 * 1024  # safe on v7x (64 MiB phys) and generous on v5e/v6e


def _linear_dims(M, K, N):
    tm, Mp = _choose_tile(M, 16, _TM_MAX)    # 16: bf16 sublane packing
    tk, Kp = _choose_tile(K, 128, _TK_MAX)
    tn, Np = _choose_tile(N, 128, _TN_MAX)
    return (tm, tk, tn), (Mp, Kp, Np)


# ---------------------------------------------------------------------------
# Pallas kernel: tiled  y = relu?(x @ w + b)  with f32 VMEM accumulator.
# Bias is folded into the accumulator init (no epilogue add).
# ---------------------------------------------------------------------------
def _matmul_bias_kernel(x_ref, w_ref, b_ref, o_ref, acc_ref, *, apply_relu):
    k = pl.program_id(2)

    @pl.when(k == 0)
    def _():
        acc_ref[...] = jnp.broadcast_to(b_ref[...], acc_ref.shape)

    acc_ref[...] += jnp.dot(x_ref[...], w_ref[...],
                            preferred_element_type=jnp.float32)

    @pl.when(k == pl.num_programs(2) - 1)
    def _():
        out = acc_ref[...]
        if apply_relu:
            out = jnp.maximum(out, 0.0)
        o_ref[...] = out.astype(o_ref.dtype)


def pallas_linear(x, w_padded, b_padded, n_out, *, relu, out_dtype=jnp.float32):
    """relu?(x @ W + b) via a tiled, double-buffered Pallas matmul."""
    M, K = x.shape
    (tm, tk, tn), (Mp, Kp, Np) = _linear_dims(M, K, n_out)
    assert w_padded.shape == (Kp, Np), (w_padded.shape, (Kp, Np))
    assert b_padded.shape == (1, Np), (b_padded.shape, (1, Np))

    xb = x.astype(jnp.bfloat16)
    if (Mp, Kp) != (M, K):
        xb = jnp.pad(xb, ((0, Mp - M), (0, Kp - K)))

    grid = (Mp // tm, Np // tn, Kp // tk)
    out = pl.pallas_call(
        functools.partial(_matmul_bias_kernel, apply_relu=relu),
        out_shape=jax.ShapeDtypeStruct((Mp, Np), out_dtype),
        grid=grid,
        in_specs=[
            pl.BlockSpec((tm, tk), lambda i, j, k: (i, k)),
            pl.BlockSpec((tk, tn), lambda i, j, k: (k, j)),
            pl.BlockSpec((1, tn), lambda i, j, k: (0, j)),
        ],
        out_specs=pl.BlockSpec((tm, tn), lambda i, j, k: (i, j)),
        scratch_shapes=[pltpu.VMEM((tm, tn), jnp.float32)],
        compiler_params=pltpu.CompilerParams(
            dimension_semantics=("parallel", "parallel", "arbitrary"),
            vmem_limit_bytes=_VMEM_LIMIT),
    )(xb, w_padded, b_padded)

    if (Mp, Np) != (M, n_out):
        out = out[:M, :n_out]
    return out


# ---------------------------------------------------------------------------
# Fused FC head: out = (relu(x @ W1 + b1)) @ W2 + b2  in a single pallas_call.
# Hidden (512) fits one N tile; the second matmul runs on the final K step.
# ---------------------------------------------------------------------------
def _fused_fc_kernel(x_ref, w1_ref, b1_ref, w2_ref, b2_ref, o_ref, acc_ref):
    k = pl.program_id(1)

    @pl.when(k == 0)
    def _():
        acc_ref[...] = jnp.broadcast_to(b1_ref[...], acc_ref.shape)

    acc_ref[...] += jnp.dot(x_ref[...], w1_ref[...],
                            preferred_element_type=jnp.float32)

    @pl.when(k == pl.num_programs(1) - 1)
    def _():
        h = jnp.maximum(acc_ref[...], 0.0).astype(jnp.bfloat16)
        out = jnp.dot(h, w2_ref[...],
                      preferred_element_type=jnp.float32) + b2_ref[...]
        o_ref[...] = out.astype(o_ref.dtype)


def pallas_fc_head(x, w1p, b1p, w2p, b2p, hidden, n_actions):
    M, K1 = x.shape
    (tm, tk, tn_h), (Mp, K1p, H1p) = _linear_dims(M, K1, hidden)
    assert tn_h == H1p, "fused head assumes hidden fits a single N tile"
    N2p = w2p.shape[1]
    assert w1p.shape == (K1p, H1p), (w1p.shape, (K1p, H1p))
    assert b1p.shape == (1, H1p)
    assert w2p.shape == (H1p, N2p)
    assert b2p.shape == (1, N2p)

    xb = x.astype(jnp.bfloat16)
    if (Mp, K1p) != (M, K1):
        xb = jnp.pad(xb, ((0, Mp - M), (0, K1p - K1)))

    grid = (Mp // tm, K1p // tk)
    out = pl.pallas_call(
        _fused_fc_kernel,
        out_shape=jax.ShapeDtypeStruct((Mp, N2p), jnp.float32),
        grid=grid,
        in_specs=[
            pl.BlockSpec((tm, tk), lambda i, k: (i, k)),
            pl.BlockSpec((tk, H1p), lambda i, k: (k, 0)),
            pl.BlockSpec((1, H1p), lambda i, k: (0, 0)),
            pl.BlockSpec((H1p, N2p), lambda i, k: (0, 0)),
            pl.BlockSpec((1, N2p), lambda i, k: (0, 0)),
        ],
        out_specs=pl.BlockSpec((tm, N2p), lambda i, k: (i, 0)),
        scratch_shapes=[pltpu.VMEM((tm, H1p), jnp.float32)],
        compiler_params=pltpu.CompilerParams(
            dimension_semantics=("parallel", "arbitrary"),
            vmem_limit_bytes=_VMEM_LIMIT),
    )(xb, w1p, b1p, w2p, b2p)

    if (Mp, N2p) != (M, n_actions):
        out = out[:M, :n_actions]
    return out


# ---------------------------------------------------------------------------
# Conv2d (valid padding, given stride) via bf16 im2col + Pallas matmul kernel
# ---------------------------------------------------------------------------
def conv2d_relu(x_nhwc, w_padded, b_padded, n_out, kh, kw, stride):
    N, H, W, C = x_nhwc.shape
    Ho = (H - kh) // stride + 1
    Wo = (W - kw) // stride + 1

    # im2col in bf16; patches ordered (kh, kw, C) to match the weight layout.
    # TODO(synk): fuse the im2col gather into the kernel (sum of kh*kw shifted
    # matmuls over the raw NHWC input) to remove the kh*kw HBM read
    # amplification entirely.
    patches = []
    for i in range(kh):
        for j in range(kw):
            patches.append(
                x_nhwc[:, i:i + stride * Ho:stride, j:j + stride * Wo:stride, :])
    cols = jnp.concatenate(patches, axis=-1).reshape(N * Ho * Wo, kh * kw * C)

    y = pallas_linear(cols, w_padded, b_padded, n_out, relu=True,
                      out_dtype=jnp.bfloat16)
    return y.reshape(N, Ho, Wo, n_out)


# ---------------------------------------------------------------------------
# Parameters: raw (torch layout) init + hoisted matmul-layout preparation
# ---------------------------------------------------------------------------
def conv_out_spatial(h, w):
    h = (h - 8) // 4 + 1
    w = (w - 8) // 4 + 1
    h = (h - 4) // 2 + 1
    w = (w - 4) // 2 + 1
    h = (h - 3) // 1 + 1
    w = (w - 3) // 1 + 1
    return h, w


def init_dqn_params(key, input_shape, n_actions):
    c_in, H, W = input_shape
    ho, wo = conv_out_spatial(H, W)
    conv_out_size = 64 * ho * wo  # mirrors DQN._get_conv_out

    ks = jax.random.split(key, 10)

    def w(k, shape, fan_in):
        return jax.random.normal(k, shape, jnp.float32) * (1.0 / jnp.sqrt(fan_in))

    params = {
        # conv weights in PyTorch layout (C_out, C_in, kh, kw)
        "c1_w": w(ks[0], (32, c_in, 8, 8), c_in * 8 * 8),
        "c1_b": w(ks[1], (32,), c_in * 8 * 8),
        "c2_w": w(ks[2], (64, 32, 4, 4), 32 * 4 * 4),
        "c2_b": w(ks[3], (64,), 32 * 4 * 4),
        "c3_w": w(ks[4], (64, 64, 3, 3), 64 * 3 * 3),
        "c3_b": w(ks[5], (64,), 64 * 3 * 3),
        # fc weights stored as (in, out): y = x @ W + b
        "fc1_w": w(ks[6], (conv_out_size, 512), conv_out_size),
        "fc1_b": w(ks[7], (512,), conv_out_size),
        "fc2_w": w(ks[8], (512, n_actions), 512),
        "fc2_b": w(ks[9], (n_actions,), 512),
    }
    return params, conv_out_size


def _prep_matmul_weight(w_mat, b, K, N):
    _, (_, Kp, Np) = _linear_dims(16, K, N)  # M irrelevant for weight padding
    wp = jnp.zeros((Kp, Np), jnp.bfloat16).at[:K, :N].set(
        w_mat.astype(jnp.bfloat16))
    bp = jnp.zeros((1, Np), jnp.float32).at[0, :N].set(b.astype(jnp.float32))
    return wp, bp


def prepare_params(raw, input_shape):
    """Hoist all weight layout work (transpose/reshape/pad/bf16) out of forward."""
    _, H, W = input_shape
    ho, wo = conv_out_spatial(H, W)

    prepped, cfg = {}, {}
    for name, stride in (("c1", 4), ("c2", 2), ("c3", 1)):
        w = raw[f"{name}_w"]
        b = raw[f"{name}_b"]
        O, C, kh, kw = w.shape
        w_mat = jnp.transpose(w, (2, 3, 1, 0)).reshape(kh * kw * C, O)
        wp, bp = _prep_matmul_weight(w_mat, b, kh * kw * C, O)
        prepped[f"{name}_w"], prepped[f"{name}_b"] = wp, bp
        cfg[name] = {"n": O, "kh": kh, "kw": kw, "stride": stride}

    # fc1: permute rows from the torch NCHW-flatten order to the NHWC-flatten
    # order so the forward pass can skip the NHWC->NCHW transpose.
    w1 = raw["fc1_w"]                      # (64*ho*wo [NCHW order], 512)
    K1, H1 = w1.shape
    w1_nhwc = jnp.transpose(w1.reshape(64, ho, wo, H1),
                            (1, 2, 0, 3)).reshape(K1, H1)
    prepped["fc1_w"], prepped["fc1_b"] = _prep_matmul_weight(
        w1_nhwc, raw["fc1_b"], K1, H1)

    w2 = raw["fc2_w"]
    K2, N2 = w2.shape
    prepped["fc2_w"], prepped["fc2_b"] = _prep_matmul_weight(
        w2, raw["fc2_b"], K2, N2)

    cfg["hidden"] = H1
    cfg["n_actions"] = N2
    return prepped, cfg


# ---------------------------------------------------------------------------
# Forward (built as a jitted closure over the static layer config)
# ---------------------------------------------------------------------------
def build_dqn_forward(cfg):
    @jax.jit
    def fwd(p, x_nchw):
        # input NCHW (PyTorch); convs run in NHWC via bf16 im2col; the flatten
        # stays in NHWC order because fc1's weight rows were pre-permuted.
        x = jnp.transpose(x_nchw, (0, 2, 3, 1)).astype(jnp.bfloat16)   # NHWC
        for name in ("c1", "c2", "c3"):
            c = cfg[name]
            x = conv2d_relu(x, p[f"{name}_w"], p[f"{name}_b"],
                            c["n"], c["kh"], c["kw"], c["stride"])
        x = x.reshape(x.shape[0], -1)                                  # NHWC flatten
        return pallas_fc_head(x, p["fc1_w"], p["fc1_b"],
                              p["fc2_w"], p["fc2_b"],
                              cfg["hidden"], cfg["n_actions"])
    return fwd


# ---------------------------------------------------------------------------
# Pure-JAX reference mirroring the precision policy
# (bf16 matmuls + bf16 intermediate activations, f32 accumulation).
# ---------------------------------------------------------------------------
def dqn_forward_ref(params, x_nchw):
    def conv(x, w, b, s):
        y = jax.lax.conv_general_dilated(
            x.astype(jnp.bfloat16), w.astype(jnp.bfloat16),
            window_strides=(s, s), padding="VALID",
            dimension_numbers=("NCHW", "OIHW", "NCHW"),
            preferred_element_type=jnp.float32)
        return jax.nn.relu(y + b[None, :, None, None]).astype(jnp.bfloat16)

    x = conv(x_nchw, params["c1_w"], params["c1_b"], 4)
    x = conv(x, params["c2_w"], params["c2_b"], 2)
    x = conv(x, params["c3_w"], params["c3_b"], 1)
    x = x.reshape(x.shape[0], -1)          # NCHW flatten (torch .view order)
    h = jnp.dot(x, params["fc1_w"].astype(jnp.bfloat16),
                preferred_element_type=jnp.float32) + params["fc1_b"]
    h = jax.nn.relu(h).astype(jnp.bfloat16)
    return jnp.dot(h, params["fc2_w"].astype(jnp.bfloat16),
                   preferred_element_type=jnp.float32) + params["fc2_b"]


if __name__ == "__main__":
    # Smallest spatial size the conv stack supports is 36x36 (-> 8 -> 3 -> 1).
    batch, channels, spatial, n_actions = 2, 4, 36, 6
    input_shape = (channels, spatial, spatial)

    key = jax.random.PRNGKey(0)
    k_params, k_x = jax.random.split(key)
    raw_params, conv_out_size = init_dqn_params(k_params, input_shape, n_actions)
    prepped, cfg = prepare_params(raw_params, input_shape)
    fwd = build_dqn_forward(cfg)

    x = jax.random.normal(k_x, (batch, channels, spatial, spatial), jnp.float32)

    out = jax.block_until_ready(fwd(prepped, x))
    assert out.shape == (batch, n_actions), out.shape

    ref = jax.block_until_ready(dqn_forward_ref(raw_params, x))
    assert jnp.allclose(out, ref, rtol=1e-2, atol=1e-2), (
        "Pallas output does not match reference")

    print("KERNEL_OK")
</pallas_src>

<mosaic_0001>
module attributes {stable_mosaic.version = 11 : i64} {
  func.func @_matmul_bias_kernel(%arg0: i32, %arg1: i32, %arg2: i32, %arg3: memref<128x256xbf16, #tpu.memory_space<vmem>>, %arg4: memref<256x128xbf16, #tpu.memory_space<vmem>>, %arg5: memref<1x128xf32, #tpu.memory_space<vmem>>, %arg6: memref<128x128xbf16, #tpu.memory_space<vmem>>, %arg7: memref<128x128xf32, #tpu.memory_space<vmem>>) attributes {dimension_semantics = [#tpu.dimension_semantics<parallel>, #tpu.dimension_semantics<parallel>, #tpu.dimension_semantics<arbitrary>], iteration_bounds = array<i64: 1, 1, 1>, scalar_prefetch = 0 : i64, scratch_operands = 1 : i64, tpu.core_type = #tpu.core_type<tc>, window_params = [{transform_indices = @transform_0, window_bounds = array<i64: 128, 256>}, {transform_indices = @transform_1, window_bounds = array<i64: 256, 128>}, {transform_indices = @transform_2, window_bounds = array<i64: 1, 128>}, {transform_indices = @transform_3, window_bounds = array<i64: 128, 128>}]} {
    %c0_i32 = arith.constant 0 : i32
    %0 = arith.cmpi eq, %arg2, %c0_i32 : i32
    %1 = arith.extui %0 : i1 to i32
    %c0_i32_0 = arith.constant 0 : i32
    %2 = arith.cmpi ne, %1, %c0_i32_0 : i32
    scf.if %2 {
      %c0_10 = arith.constant 0 : index
      %c0_11 = arith.constant 0 : index
      %12 = vector.load %arg5[%c0_10, %c0_11] : memref<1x128xf32, #tpu.memory_space<vmem>>, vector<1x128xf32>
      %13 = vector.shape_cast %12 : vector<1x128xf32> to vector<1x128xf32>
      %14 = vector.broadcast %13 : vector<1x128xf32> to vector<128x128xf32>
      %c0_12 = arith.constant 0 : index
      %c0_13 = arith.constant 0 : index
      %15 = vector.load %arg7[%c0_12, %c0_13] : memref<128x128xf32, #tpu.memory_space<vmem>>, vector<128x128xf32>
      tpu.vector_store %arg7[%c0_12, %c0_13], %14 {strides = array<i32>} : memref<128x128xf32, #tpu.memory_space<vmem>>, vector<128x128xf32>,
    } else {
    }
    %c0 = arith.constant 0 : index
    %c0_1 = arith.constant 0 : index
    %3 = vector.load %arg7[%c0, %c0_1] : memref<128x128xf32, #tpu.memory_space<vmem>>, vector<128x128xf32>
    %c0_2 = arith.constant 0 : index
    %c0_3 = arith.constant 0 : index
    %4 = vector.load %arg3[%c0_2, %c0_3] : memref<128x256xbf16, #tpu.memory_space<vmem>>, vector<128x256xbf16>
    %c0_4 = arith.constant 0 : index
    %c0_5 = arith.constant 0 : index
    %5 = vector.load %arg4[%c0_4, %c0_5] : memref<256x128xbf16, #tpu.memory_space<vmem>>, vector<256x128xbf16>
    %cst = arith.constant dense<0.000000e+00> : vector<128x128xf32>
    %6 = tpu.matmul %4, %5, %cst {dimension_numbers = #tpu.dot_dimension_numbers<[1], [0], [0], [1], [0, 0, 1, 1], [], []>} : vector<128x256xbf16>, vector<256x128xbf16>, vector<128x128xf32> -> vector<128x128xf32>
    %7 = arith.addf %3, %6 : vector<128x128xf32>
    %c0_6 = arith.constant 0 : index
    %c0_7 = arith.constant 0 : index
    %8 = vector.load %arg7[%c0_6, %c0_7] : memref<128x128xf32, #tpu.memory_space<vmem>>, vector<128x128xf32>
    tpu.vector_store %arg7[%c0_6, %c0_7], %7 {strides = array<i32>} : memref<128x128xf32, #tpu.memory_space<vmem>>, vector<128x128xf32>,
    %c0_i32_8 = arith.constant 0 : i32
    %9 = arith.cmpi eq, %arg2, %c0_i32_8 : i32
    %10 = arith.extui %9 : i1 to i32
    %c0_i32_9 = arith.constant 0 : i32
    %11 = arith.cmpi ne, %10, %c0_i32_9 : i32
    scf.if %11 {
      %c0_10 = arith.constant 0 : index
      %c0_11 = arith.constant 0 : index
      %12 = vector.load %arg7[%c0_10, %c0_11] : memref<128x128xf32, #tpu.memory_space<vmem>>, vector<128x128xf32>
      %cst_12 = arith.constant 0.000000e+00 : f32
      %13 = vector.broadcast %cst_12 : f32 to vector<128x128xf32>
      %14 = arith.maximumf %12, %13 : vector<128x128xf32>
      %15 = arith.truncf %14 : vector<128x128xf32> to vector<128x128xbf16>
      %c0_13 = arith.constant 0 : index
      %c0_14 = arith.constant 0 : index
      %16 = vector.load %arg6[%c0_13, %c0_14] : memref<128x128xbf16, #tpu.memory_space<vmem>>, vector<128x128xbf16>
      tpu.vector_store %arg6[%c0_13, %c0_14], %15 {strides = array<i32>} : memref<128x128xbf16, #tpu.memory_space<vmem>>, vector<128x128xbf16>,
    } else {
    }
    return
  }
  func.func @transform_0(%arg0: i32, %arg1: i32, %arg2: i32) -> (i32, i32) {
    %c0_i32 = arith.constant 0 : i32
    return %arg0, %arg2 : i32, i32
  }
  func.func @transform_1(%arg0: i32, %arg1: i32, %arg2: i32) -> (i32, i32) {
    %c0_i32 = arith.constant 0 : i32
    return %arg2, %arg1 : i32, i32
  }
  func.func @transform_2(%arg0: i32, %arg1: i32, %arg2: i32) -> (i32, i32) {
    %c0_i32 = arith.constant 0 : i32
    %c0_i32_0 = arith.constant 0 : i32
    return %c0_i32, %arg1 : i32, i32
  }
  func.func @transform_3(%arg0: i32, %arg1: i32, %arg2: i32) -> (i32, i32) {
    %c0_i32 = arith.constant 0 : i32
    return %arg0, %arg1 : i32, i32
  }
}

module attributes {stable_mosaic.version = 11 : i64} {
  func.func @_matmul_bias_kernel(%arg0: i32, %arg1: i32, %arg2: i32, %arg3: memref<32x512xbf16, #tpu.memory_space<vmem>>, %arg4: memref<512x128xbf16, #tpu.memory_space<vmem>>, %arg5: memref<1x128xf32, #tpu.memory_space<vmem>>, %arg6: memref<32x128xbf16, #tpu.memory_space<vmem>>, %arg7: memref<32x128xf32, #tpu.memory_space<vmem>>) attributes {dimension_semantics = [#tpu.dimension_semantics<parallel>, #tpu.dimension_semantics<parallel>, #tpu.dimension_semantics<arbitrary>], iteration_bounds = array<i64: 1, 1, 1>, scalar_prefetch = 0 : i64, scratch_operands = 1 : i64, tpu.core_type = #tpu.core_type<tc>, window_params = [{transform_indices = @transform_0, window_bounds = array<i64: 32, 512>}, {transform_indices = @transform_1, window_bounds = array<i64: 512, 128>}, {transform_indices = @transform_2, window_bounds = array<i64: 1, 128>}, {transform_indices = @transform_3, window_bounds = array<i64: 32, 128>}]} {
    %c0_i32 = arith.constant 0 : i32
    %0 = arith.cmpi eq, %arg2, %c0_i32 : i32
    %1 = arith.extui %0 : i1 to i32
    %c0_i32_0 = arith.constant 0 : i32
    %2 = arith.cmpi ne, %1, %c0_i32_0 : i32
    scf.if %2 {
      %c0_10 = arith.constant 0 : index
      %c0_11 = arith.constant 0 : index
      %12 = vector.load %arg5[%c0_10, %c0_11] : memref<1x128xf32, #tpu.memory_space<vmem>>, vector<1x128xf32>
      %13 = vector.shape_cast %12 : vector<1x128xf32> to vector<1x128xf32>
      %14 = vector.broadcast %13 : vector<1x128xf32> to vector<32x128xf32>
      %c0_12 = arith.constant 0 : index
      %c0_13 = arith.constant 0 : index
      %15 = vector.load %arg7[%c0_12, %c0_13] : memref<32x128xf32, #tpu.memory_space<vmem>>, vector<32x128xf32>
      tpu.vector_store %arg7[%c0_12, %c0_13], %14 {strides = array<i32>} : memref<32x128xf32, #tpu.memory_space<vmem>>, vector<32x128xf32>,
    } else {
    }
    %c0 = arith.constant 0 : index
    %c0_1 = arith.constant 0 : index
    %3 = vector.load %arg7[%c0, %c0_1] : memref<32x128xf32, #tpu.memory_space<vmem>>, vector<32x128xf32>
    %c0_2 = arith.constant 0 : index
    %c0_3 = arith.constant 0 : index
    %4 = vector.load %arg3[%c0_2, %c0_3] : memref<32x512xbf16, #tpu.memory_space<vmem>>, vector<32x512xbf16>
    %c0_4 = arith.constant 0 : index
    %c0_5 = arith.constant 0 : index
    %5 = vector.load %arg4[%c0_4, %c0_5] : memref<512x128xbf16, #tpu.memory_space<vmem>>, vector<512x128xbf16>
    %cst = arith.constant dense<0.000000e+00> : vector<32x128xf32>
    %6 = tpu.matmul %4, %5, %cst {dimension_numbers = #tpu.dot_dimension_numbers<[1], [0], [0], [1], [0, 0, 1, 1], [], []>} : vector<32x512xbf16>, vector<512x128xbf16>, vector<32x128xf32> -> vector<32x128xf32>
    %7 = arith.addf %3, %6 : vector<32x128xf32>
    %c0_6 = arith.constant 0 : index
    %c0_7 = arith.constant 0 : index
    %8 = vector.load %arg7[%c0_6, %c0_7] : memref<32x128xf32, #tpu.memory_space<vmem>>, vector<32x128xf32>
    tpu.vector_store %arg7[%c0_6, %c0_7], %7 {strides = array<i32>} : memref<32x128xf32, #tpu.memory_space<vmem>>, vector<32x128xf32>,
    %c0_i32_8 = arith.constant 0 : i32
    %9 = arith.cmpi eq, %arg2, %c0_i32_8 : i32
    %10 = arith.extui %9 : i1 to i32
    %c0_i32_9 = arith.constant 0 : i32
    %11 = arith.cmpi ne, %10, %c0_i32_9 : i32
    scf.if %11 {
      %c0_10 = arith.constant 0 : index
      %c0_11 = arith.constant 0 : index
      %12 = vector.load %arg7[%c0_10, %c0_11] : memref<32x128xf32, #tpu.memory_space<vmem>>, vector<32x128xf32>
      %cst_12 = arith.constant 0.000000e+00 : f32
      %13 = vector.broadcast %cst_12 : f32 to vector<32x128xf32>
      %14 = arith.maximumf %12, %13 : vector<32x128xf32>
      %15 = arith.truncf %14 : vector<32x128xf32> to vector<32x128xbf16>
      %c0_13 = arith.constant 0 : index
      %c0_14 = arith.constant 0 : index
      %16 = vector.load %arg6[%c0_13, %c0_14] : memref<32x128xbf16, #tpu.memory_space<vmem>>, vector<32x128xbf16>
      tpu.vector_store %arg6[%c0_13, %c0_14], %15 {strides = array<i32>} : memref<32x128xbf16, #tpu.memory_space<vmem>>, vector<32x128xbf16>,
    } else {
    }
    return
  }
  func.func @transform_0(%arg0: i32, %arg1: i32, %arg2: i32) -> (i32, i32) {
    %c0_i32 = arith.constant 0 : i32
    return %arg0, %arg2 : i32, i32
  }
  func.func @transform_1(%arg0: i32, %arg1: i32, %arg2: i32) -> (i32, i32) {
    %c0_i32 = arith.constant 0 : i32
    return %arg2, %arg1 : i32, i32
  }
  func.func @transform_2(%arg0: i32, %arg1: i32, %arg2: i32) -> (i32, i32) {
    %c0_i32 = arith.constant 0 : i32
    %c0_i32_0 = arith.constant 0 : i32
    return %c0_i32, %arg1 : i32, i32
  }
  func.func @transform_3(%arg0: i32, %arg1: i32, %arg2: i32) -> (i32, i32) {
    %c0_i32 = arith.constant 0 : i32
    return %arg0, %arg1 : i32, i32
  }
}

module attributes {stable_mosaic.version = 11 : i64} {
  func.func @_matmul_bias_kernel(%arg0: i32, %arg1: i32, %arg2: i32, %arg3: memref<16x384xbf16, #tpu.memory_space<vmem>>, %arg4: memref<384x128xbf16, #tpu.memory_space<vmem>>, %arg5: memref<1x128xf32, #tpu.memory_space<vmem>>, %arg6: memref<16x128xbf16, #tpu.memory_space<vmem>>, %arg7: memref<16x128xf32, #tpu.memory_space<vmem>>) attributes {dimension_semantics = [#tpu.dimension_semantics<parallel>, #tpu.dimension_semantics<parallel>, #tpu.dimension_semantics<arbitrary>], iteration_bounds = array<i64: 1, 1, 2>, scalar_prefetch = 0 : i64, scratch_operands = 1 : i64, tpu.core_type = #tpu.core_type<tc>, window_params = [{transform_indices = @transform_0, window_bounds = array<i64: 16, 384>}, {transform_indices = @transform_1, window_bounds = array<i64: 384, 128>}, {transform_indices = @transform_2, window_bounds = array<i64: 1, 128>}, {transform_indices = @transform_3, window_bounds = array<i64: 16, 128>}]} {
    %c0_i32 = arith.constant 0 : i32
    %0 = arith.cmpi eq, %arg2, %c0_i32 : i32
    %1 = arith.extui %0 : i1 to i32
    %c0_i32_0 = arith.constant 0 : i32
    %2 = arith.cmpi ne, %1, %c0_i32_0 : i32
    scf.if %2 {
      %c0_9 = arith.constant 0 : index
      %c0_10 = arith.constant 0 : index
      %12 = vector.load %arg5[%c0_9, %c0_10] : memref<1x128xf32, #tpu.memory_space<vmem>>, vector<1x128xf32>
      %13 = vector.shape_cast %12 : vector<1x128xf32> to vector<1x128xf32>
      %14 = vector.broadcast %13 : vector<1x128xf32> to vector<16x128xf32>
      %c0_11 = arith.constant 0 : index
      %c0_12 = arith.constant 0 : index
      %15 = vector.load %arg7[%c0_11, %c0_12] : memref<16x128xf32, #tpu.memory_space<vmem>>, vector<16x128xf32>
      tpu.vector_store %arg7[%c0_11, %c0_12], %14 {strides = array<i32>} : memref<16x128xf32, #tpu.memory_space<vmem>>, vector<16x128xf32>,
    } else {
    }
    %c0 = arith.constant 0 : index
    %c0_1 = arith.constant 0 : index
    %3 = vector.load %arg7[%c0, %c0_1] : memref<16x128xf32, #tpu.memory_space<vmem>>, vector<16x128xf32>
    %c0_2 = arith.constant 0 : index
    %c0_3 = arith.constant 0 : index
    %4 = vector.load %arg3[%c0_2, %c0_3] : memref<16x384xbf16, #tpu.memory_space<vmem>>, vector<16x384xbf16>
    %c0_4 = arith.constant 0 : index
    %c0_5 = arith.constant 0 : index
    %5 = vector.load %arg4[%c0_4, %c0_5] : memref<384x128xbf16, #tpu.memory_space<vmem>>, vector<384x128xbf16>
    %cst = arith.constant dense<0.000000e+00> : vector<16x128xf32>
    %6 = tpu.matmul %4, %5, %cst {dimension_numbers = #tpu.dot_dimension_numbers<[1], [0], [0], [1], [0, 0, 1, 1], [], []>} : vector<16x384xbf16>, vector<384x128xbf16>, vector<16x128xf32> -> vector<16x128xf32>
    %7 = arith.addf %3, %6 : vector<16x128xf32>
    %c0_6 = arith.constant 0 : index
    %c0_7 = arith.constant 0 : index
    %8 = vector.load %arg7[%c0_6, %c0_7] : memref<16x128xf32, #tpu.memory_space<vmem>>, vector<16x128xf32>
    tpu.vector_store %arg7[%c0_6, %c0_7], %7 {strides = array<i32>} : memref<16x128xf32, #tpu.memory_space<vmem>>, vector<16x128xf32>,
    %c1_i32 = arith.constant 1 : i32
    %9 = arith.cmpi eq, %arg2, %c1_i32 : i32
    %10 = arith.extui %9 : i1 to i32
    %c0_i32_8 = arith.constant 0 : i32
    %11 = arith.cmpi ne, %10, %c0_i32_8 : i32
    scf.if %11 {
      %c0_9 = arith.constant 0 : index
      %c0_10 = arith.constant 0 : index
      %12 = vector.load %arg7[%c0_9, %c0_10] : memref<16x128xf32, #tpu.memory_space<vmem>>, vector<16x128xf32>
      %cst_11 = arith.constant 0.000000e+00 : f32
      %13 = vector.broadcast %cst_11 : f32 to vector<16x128xf32>
      %14 = arith.maximumf %12, %13 : vector<16x128xf32>
      %15 = arith.truncf %14 : vector<16x128xf32> to vector<16x128xbf16>
      %c0_12 = arith.constant 0 : index
      %c0_13 = arith.constant 0 : index
      %16 = vector.load %arg6[%c0_12, %c0_13] : memref<16x128xbf16, #tpu.memory_space<vmem>>, vector<16x128xbf16>
      tpu.vector_store %arg6[%c0_12, %c0_13], %15 {strides = array<i32>} : memref<16x128xbf16, #tpu.memory_space<vmem>>, vector<16x128xbf16>,
    } else {
    }
    return
  }
  func.func @transform_0(%arg0: i32, %arg1: i32, %arg2: i32) -> (i32, i32) {
    %c0_i32 = arith.constant 0 : i32
    return %arg0, %arg2 : i32, i32
  }
  func.func @transform_1(%arg0: i32, %arg1: i32, %arg2: i32) -> (i32, i32) {
    %c0_i32 = arith.constant 0 : i32
    return %arg2, %arg1 : i32, i32
  }
  func.func @transform_2(%arg0: i32, %arg1: i32, %arg2: i32) -> (i32, i32) {
    %c0_i32 = arith.constant 0 : i32
    %c0_i32_0 = arith.constant 0 : i32
    return %c0_i32, %arg1 : i32, i32
  }
  func.func @transform_3(%arg0: i32, %arg1: i32, %arg2: i32) -> (i32, i32) {
    %c0_i32 = arith.constant 0 : i32
    return %arg0, %arg1 : i32, i32
  }
}

module attributes {stable_mosaic.version = 11 : i64} {
  func.func @_fused_fc_kernel(%arg0: i32, %arg1: i32, %arg2: memref<16x128xbf16, #tpu.memory_space<vmem>>, %arg3: memref<128x512xbf16, #tpu.memory_space<vmem>>, %arg4: memref<1x512xf32, #tpu.memory_space<vmem>>, %arg5: memref<512x128xbf16, #tpu.memory_space<vmem>>, %arg6: memref<1x128xf32, #tpu.memory_space<vmem>>, %arg7: memref<16x128xf32, #tpu.memory_space<vmem>>, %arg8: memref<16x512xf32, #tpu.memory_space<vmem>>) attributes {dimension_semantics = [#tpu.dimension_semantics<parallel>, #tpu.dimension_semantics<arbitrary>], iteration_bounds = array<i64: 1, 1>, scalar_prefetch = 0 : i64, scratch_operands = 1 : i64, tpu.core_type = #tpu.core_type<tc>, window_params = [{transform_indices = @transform_0, window_bounds = array<i64: 16, 128>}, {transform_indices = @transform_1, window_bounds = array<i64: 128, 512>}, {pipeline_mode = #tpu.pipeline_mode<synchronous>, transform_indices = @transform_2, window_bounds = array<i64: 1, 512>}, {pipeline_mode = #tpu.pipeline_mode<synchronous>, transform_indices = @transform_3, window_bounds = array<i64: 512, 128>}, {pipeline_mode = #tpu.pipeline_mode<synchronous>, transform_indices = @transform_4, window_bounds = array<i64: 1, 128>}, {transform_indices = @transform_5, window_bounds = array<i64: 16, 128>}]} {
    %c0_i32 = arith.constant 0 : i32
    %0 = arith.cmpi eq, %arg1, %c0_i32 : i32
    %1 = arith.extui %0 : i1 to i32
    %c0_i32_0 = arith.constant 0 : i32
    %2 = arith.cmpi ne, %1, %c0_i32_0 : i32
    scf.if %2 {
      %c0_10 = arith.constant 0 : index
      %c0_11 = arith.constant 0 : index
      %12 = vector.load %arg4[%c0_10, %c0_11] : memref<1x512xf32, #tpu.memory_space<vmem>>, vector<1x512xf32>
      %13 = vector.shape_cast %12 : vector<1x512xf32> to vector<1x512xf32>
      %14 = vector.broadcast %13 : vector<1x512xf32> to vector<16x512xf32>
      %c0_12 = arith.constant 0 : index
      %c0_13 = arith.constant 0 : index
      %15 = vector.load %arg8[%c0_12, %c0_13] : memref<16x512xf32, #tpu.memory_space<vmem>>, vector<16x512xf32>
      tpu.vector_store %arg8[%c0_12, %c0_13], %14 {strides = array<i32>} : memref<16x512xf32, #tpu.memory_space<vmem>>, vector<16x512xf32>,
    } else {
    }
    %c0 = arith.constant 0 : index
    %c0_1 = arith.constant 0 : index
    %3 = vector.load %arg8[%c0, %c0_1] : memref<16x512xf32, #tpu.memory_space<vmem>>, vector<16x512xf32>
    %c0_2 = arith.constant 0 : index
    %c0_3 = arith.constant 0 : index
    %4 = vector.load %arg2[%c0_2, %c0_3] : memref<16x128xbf16, #tpu.memory_space<vmem>>, vector<16x128xbf16>
    %c0_4 = arith.constant 0 : index
    %c0_5 = arith.constant 0 : index
    %5 = vector.load %arg3[%c0_4, %c0_5] : memref<128x512xbf16, #tpu.memory_space<vmem>>, vector<128x512xbf16>
    %cst = arith.constant dense<0.000000e+00> : vector<16x512xf32>
    %6 = tpu.matmul %4, %5, %cst {dimension_numbers = #tpu.dot_dimension_numbers<[1], [0], [0], [1], [0, 0, 1, 1], [], []>} : vector<16x128xbf16>, vector<128x512xbf16>, vector<16x512xf32> -> vector<16x512xf32>
    %7 = arith.addf %3, %6 : vector<16x512xf32>
    %c0_6 = arith.constant 0 : index
    %c0_7 = arith.constant 0 : index
    %8 = vector.load %arg8[%c0_6, %c0_7] : memref<16x512xf32, #tpu.memory_space<vmem>>, vector<16x512xf32>
    tpu.vector_store %arg8[%c0_6, %c0_7], %7 {strides = array<i32>} : memref<16x512xf32, #tpu.memory_space<vmem>>, vector<16x512xf32>,
    %c0_i32_8 = arith.constant 0 : i32
    %9 = arith.cmpi eq, %arg1, %c0_i32_8 : i32
    %10 = arith.extui %9 : i1 to i32
    %c0_i32_9 = arith.constant 0 : i32
    %11 = arith.cmpi ne, %10, %c0_i32_9 : i32
    scf.if %11 {
      %c0_10 = arith.constant 0 : index
      %c0_11 = arith.constant 0 : index
      %12 = vector.load %arg8[%c0_10, %c0_11] : memref<16x512xf32, #tpu.memory_space<vmem>>, vector<16x512xf32>
      %cst_12 = arith.constant 0.000000e+00 : f32
      %13 = vector.broadcast %cst_12 : f32 to vector<16x512xf32>
      %14 = arith.maximumf %12, %13 : vector<16x512xf32>
      %15 = arith.truncf %14 : vector<16x512xf32> to vector<16x512xbf16>
      %c0_13 = arith.constant 0 : index
      %c0_14 = arith.constant 0 : index
      %16 = vector.load %arg5[%c0_13, %c0_14] : memref<512x128xbf16, #tpu.memory_space<vmem>>, vector<512x128xbf16>
      %cst_15 = arith.constant dense<0.000000e+00> : vector<16x128xf32>
      %17 = tpu.matmul %15, %16, %cst_15 {dimension_numbers = #tpu.dot_dimension_numbers<[1], [0], [0], [1], [0, 0, 1, 1], [], []>} : vector<16x512xbf16>, vector<512x128xbf16>, vector<16x128xf32> -> vector<16x128xf32>
      %c0_16 = arith.constant 0 : index
      %c0_17 = arith.constant 0 : index
      %18 = vector.load %arg6[%c0_16, %c0_17] : memref<1x128xf32, #tpu.memory_space<vmem>>, vector<1x128xf32>
      %19 = vector.broadcast %18 : vector<1x128xf32> to vector<16x128xf32>
      %20 = arith.addf %17, %19 : vector<16x128xf32>
      %c0_18 = arith.constant 0 : index
      %c0_19 = arith.constant 0 : index
      %21 = vector.load %arg7[%c0_18, %c0_19] : memref<16x128xf32, #tpu.memory_space<vmem>>, vector<16x128xf32>
      tpu.vector_store %arg7[%c0_18, %c0_19], %20 {strides = array<i32>} : memref<16x128xf32, #tpu.memory_space<vmem>>, vector<16x128xf32>,
    } else {
    }
    return
  }
  func.func @transform_0(%arg0: i32, %arg1: i32) -> (i32, i32) {
    %c0_i32 = arith.constant 0 : i32
    return %arg0, %arg1 : i32, i32
  }
  func.func @transform_1(%arg0: i32, %arg1: i32) -> (i32, i32) {
    %c0_i32 = arith.constant 0 : i32
    %c0_i32_0 = arith.constant 0 : i32
    return %arg1, %c0_i32 : i32, i32
  }
  func.func @transform_2(%arg0: i32, %arg1: i32) -> (i32, i32) {
    %c0_i32 = arith.constant 0 : i32
    %c0_i32_0 = arith.constant 0 : i32
    %c0_i32_1 = arith.constant 0 : i32
    return %c0_i32, %c0_i32_0 : i32, i32
  }
  func.func @transform_3(%arg0: i32, %arg1: i32) -> (i32, i32) {
    %c0_i32 = arith.constant 0 : i32
    %c0_i32_0 = arith.constant 0 : i32
    %c0_i32_1 = arith.constant 0 : i32
    return %c0_i32, %c0_i32_0 : i32, i32
  }
  func.func @transform_4(%arg0: i32, %arg1: i32) -> (i32, i32) {
    %c0_i32 = arith.constant 0 : i32
    %c0_i32_0 = arith.constant 0 : i32
    %c0_i32_1 = arith.constant 0 : i32
    return %c0_i32, %c0_i32_0 : i32, i32
  }
  func.func @transform_5(%arg0: i32, %arg1: i32) -> (i32, i32) {
    %c0_i32 = arith.constant 0 : i32
    %c0_i32_0 = arith.constant 0 : i32
    return %arg0, %c0_i32 : i32, i32
  }
}

</mosaic_0001>

<bundles_post_ra>
// kernel: fwd.4
= control target key start
LH: loop header
LB: loop body
LE: loop exit
PB: predicated region body
PF: predicated region fallthrough
CT: control target
= control target key end

     0   :  { %s923_s1 = inlined_call_operand.vmem [shape: bf16[256,128], index: 1, kind: input, shape index: {}]   ;;  %s924_s0 = inlined_call_operand.vmem [shape: bf16[128,256], index: 0, kind: input, shape index: {}]   ;;  %s925_s2 = inlined_call_operand.vmem [shape: f32[1,128], index: 2, kind: input, shape index: {}]   ;;  %s926_s3 = inlined_call_operand.vmem [shape: bf16[128,128], index: 3, kind: output, shape index: {}]  }
   0x1   :  { %v722_v0 = vld [vmem:[%s923_s1 + $0x40] sm:$0xff]   ;;  %v724_v2 = vld [vmem:[%s923_s1 + $0x48] sm:$0xff]   ;;  %v726_v4 = vld [vmem:[%s923_s1 + $0x50] sm:$0xff]  }
   0x2   :  { %v723_v1 = vld [vmem:[%s923_s1] sm:$0xff]   ;;  %642 = vmatprep.subr.bf16.mxu0 %v722_v0  ;;  %706 = vmatprep.subr.bf16.mxu1 %v722_v0  ;;  %v725_v3 = vld [vmem:[%s923_s1 + $0x8] sm:$0xff]   ;;  %v727_v5 = vld [vmem:[%s923_s1 + $0x10] sm:$0xff]  }
   0x3   :  { %643 = vmatpush3.bf16.msra.mxu0 %v723_v1  ;;  %714 = vmatpush3.bf16.msra.mxu1 %v723_v1  ;;  %v728_v6 = vld [vmem:[%s923_s1 + $0x58] sm:$0xff]   ;;  %v730_v8 = vld [vmem:[%s923_s1 + $0x60] sm:$0xff]   ;;  %v732_v10 = vld [vmem:[%s923_s1 + $0x68] sm:$0xff]  }
   0x4   :  { %644 = vmatprep.subr.bf16.mxu0 %v724_v2  ;;  %707 = vmatprep.subr.bf16.mxu1 %v724_v2  ;;  %v729_v7 = vld [vmem:[%s923_s1 + $0x18] sm:$0xff]   ;;  %v731_v9 = vld [vmem:[%s923_s1 + $0x20] sm:$0xff]   ;;  %v733_v13 = vld [vmem:[%s923_s1 + $0x28] sm:$0xff]  }
   0x5   :  { %v740_v11 = vld [vmem:[%s924_s0 + $0x4] ss:$8 sps:$4 sm:$0xff]   ;;  %v734_v14 = vld [vmem:[%s923_s1 + $0x70] sm:$0xff]   ;;  %v736_v16 = vld [vmem:[%s923_s1 + $0x78] sm:$0xff]  }
   0x6   :  { %v743_v12 = vld [vmem:[%s924_s0 + $0x44] ss:$8 sps:$4 sm:$0xff]   ;;  %314 = vmatprep.mubr.bf16.mxu0 %v740_v11  ;;  %v735_v15 = vld [vmem:[%s923_s1 + $0x30] sm:$0xff]   ;;  %v737_v17 = vld [vmem:[%s923_s1 + $0x38] sm:$0xff]  }
   0x7   :  { %645 = vmatpush3.bf16.msra.mxu0 %v725_v3  ;;  %715 = vmatpush3.bf16.msra.mxu1 %v725_v3  ;;  %v738_v18 = vld [vmem:[%s924_s0] ss:$8 sps:$4 sm:$0xff]   ;;  %v744_v20 = vld [vmem:[%s924_s0 + $0x14] ss:$8 sps:$4 sm:$0xff]   ;;  %v748_v22 = vld [vmem:[%s924_s0 + $0x10] ss:$8 sps:$4 sm:$0xff]  }
   0x8   :  { %646 = vmatprep.subr.bf16.mxu0 %v726_v4  ;;  %708 = vmatprep.subr.bf16.mxu1 %v726_v4  ;;  %v741_v19 = vld [vmem:[%s924_s0 + $0x40] ss:$8 sps:$4 sm:$0xff]   ;;  %v746_v21 = vld [vmem:[%s924_s0 + $0x54] ss:$8 sps:$4 sm:$0xff]   ;;  %v749_v23 = vld [vmem:[%s924_s0 + $0x50] ss:$8 sps:$4 sm:$0xff]  }
   0x9   :  { %346 = vmatprep.mubr.bf16.mxu1 %v743_v12  ;;  %v750_v24 = vld [vmem:[%s924_s0 + $0x24] ss:$8 sps:$4 sm:$0xff]   ;;  %v754_v26 = vld [vmem:[%s924_s0 + $0x20] ss:$8 sps:$4 sm:$0xff]   ;;  %v756_v28 = vld [vmem:[%s924_s0 + $0x34] ss:$8 sps:$4 sm:$0xff]  }
   0xa   :  { %v752_v25 = vld [vmem:[%s924_s0 + $0x64] ss:$8 sps:$4 sm:$0xff]   ;;  %v755_v27 = vld [vmem:[%s924_s0 + $0x60] ss:$8 sps:$4 sm:$0xff]   ;;  %v758_v29 = vld [vmem:[%s924_s0 + $0x74] ss:$8 sps:$4 sm:$0xff]  }
   0xb   :  { %647 = vmatpush3.bf16.msra.mxu0 %v727_v5  ;;  %716 = vmatpush3.bf16.msra.mxu1 %v727_v5  ;;  %v760_v30 = vld [vmem:[%s924_s0 + $0x30] ss:$8 sps:$4 sm:$0xff]   ;;  %v881_v34 = vld [vmem:[%s925_s2] ss:$0 sm:$0xff] }
   0xc   :  { %648 = vmatprep.subr.bf16.mxu0 %v728_v6  ;;  %709 = vmatprep.subr.bf16.mxu1 %v728_v6  ;;  %v761_v31 = vld [vmem:[%s924_s0 + $0x70] ss:$8 sps:$4 sm:$0xff]  }
   0xf   :  { %649 = vmatpush3.bf16.msra.mxu0 %v729_v7  ;;  %717 = vmatpush3.bf16.msra.mxu1 %v729_v7 }
  0x10   :  { %650 = vmatprep.subr.bf16.mxu0 %v730_v8  ;;  %710 = vmatprep.subr.bf16.mxu1 %v730_v8 }
  0x13   :  { %651 = vmatpush3.bf16.msra.mxu0 %v731_v9  ;;  %718 = vmatpush3.bf16.msra.mxu1 %v731_v9 }
  0x14   :  { %652 = vmatprep.subr.bf16.mxu0 %v732_v10  ;;  %711 = vmatprep.subr.bf16.mxu1 %v732_v10 }
  0x17   :  { %653 = vmatpush3.bf16.msra.mxu0 %v733_v13  ;;  %719 = vmatpush3.bf16.msra.mxu1 %v733_v13 }
  0x18   :  { %654 = vmatprep.subr.bf16.mxu0 %v734_v14  ;;  %712 = vmatprep.subr.bf16.mxu1 %v734_v14 }
  0x1b   :  { %655 = vmatpush3.bf16.msra.mxu0 %v735_v15  ;;  %720 = vmatpush3.bf16.msra.mxu1 %v735_v15 }
  0x1c   :  { %656 = vmatprep.subr.bf16.mxu0 %v736_v16  ;;  %713 = vmatprep.subr.bf16.mxu1 %v736_v16 }
  0x1f   :  { %657 = vmatpush3.bf16.msra.mxu0 %v737_v17  ;;  %721 = vmatpush3.bf16.msra.mxu1 %v737_v17 }
  0x22   :  { %315 = vmatmul.mubr.bf16.vlgmr.msra.gmra.mrb[0].mxu0 %v738_v18  ;;  %347 = vmatmul.mubr.bf16.vlgmr.msra.gmra.mrb[0].mxu1 %v741_v19 }
  0x23   :  { %322 = vmatprep.mubr.bf16.mxu0 %v744_v20  ;;  %354 = vmatprep.mubr.bf16.mxu1 %v746_v21 }
  0x2a   :  { %323 = vmatmul.mubr.bf16.gmra.mrb[4].mxu0 %v748_v22  ;;  %355 = vmatmul.mubr.bf16.gmra.mrb[4].mxu1 %v749_v23 }
  0x2b   :  { %330 = vmatprep.mubr.bf16.mxu0 %v750_v24  ;;  %362 = vmatprep.mubr.bf16.mxu1 %v752_v25 }
  0x32   :  { %331 = vmatmul.mubr.bf16.gmra.mrb[8].mxu0 %v754_v26  ;;  %363 = vmatmul.mubr.bf16.gmra.mrb[8].mxu1 %v755_v27 }
  0x33   :  { %338 = vmatprep.mubr.bf16.mxu0 %v756_v28  ;;  %370 = vmatprep.mubr.bf16.mxu1 %v758_v29 }
  0x3a   :  { %339 = vmatmul.mubr.bf16.gmra.mrb[12].mxu0 %v760_v30  ;;  %371 = vmatmul.mubr.bf16.gmra.mrb[12].mxu1 %v761_v31 }
  0xf5   :  { %v658_v32 = vpop.f32.mrb[0].mxu0  ;;  %v682_v33 = vpop.f32.mrb[0].mxu1 }
  0xf6   :  { %v659_v35 = vpop.f32.mrb[1].mxu0  ;;  %v683_v36 = vpop.f32.mrb[1].mxu1 }
  0xf7   :  { %v660_v37 = vadd.f32 %v659_v35, %v658_v32  ;;  %v684_v38 = vadd.f32 %v683_v36, %v682_v33  ;;  %v661_v39 = vpop.f32.mrb[2].mxu0  ;;  %v685_v40 = vpop.f32.mrb[2].mxu1 }
  0xf8   :  { %v662_v41 = vpop.f32.mrb[3].mxu0  ;;  %v686_v42 = vpop.f32.mrb[3].mxu1 }
  0xf9   :  { %v379_v43 = vadd.f32 %v660_v37, %v881_v34  ;;  %v387_v44 = vadd.f32 %v684_v38, %v881_v34  ;;  %v663_v45 = vadd.f32 %v662_v41, %v661_v39  ;;  %v687_v46 = vadd.f32 %v686_v42, %v685_v40 }
  0xfb   :  { %v380_v47 = vadd.f32 %v663_v45, %v881_v34  ;;  %v388_v48 = vadd.f32 %v687_v46, %v881_v34  ;;  %v430_v49 = vmax.f32 %v379_v43, 0.0  ;;  %v438_v50 = vmax.f32 %v387_v44, 0.0 }
  0xfd   :  { %v431_v51 = vmax.f32 %v380_v47, 0.0  ;;  %v439_v52 = vmax.f32 %v388_v48, 0.0  ;;  %v664_v53 = vpop.f32.mrb[4].mxu0  ;;  %v688_v54 = vpop.f32.mrb[4].mxu1 }
  0xfe   :  { %v665_v55 = vpop.f32.mrb[5].mxu0  ;;  %v689_v56 = vpop.f32.mrb[5].mxu1 }
  0xff   :  { %v598_v57 = vpack.c.bf16 %v431_v51, %v430_v49  ;;  %v618_v58 = vpack.c.bf16 %v439_v52, %v438_v50  ;;  %v666_v59 = vadd.f32 %v665_v55, %v664_v53  ;;  %v690_v60 = vadd.f32 %v689_v56, %v688_v54  ;;  %v667_v61 = vpop.f32.mrb[6].mxu0  ;;  %v691_v62 = vpop.f32.mrb[6].mxu1 }
 0x100   :  { %v668_v63 = vpop.f32.mrb[7].mxu0  ;;  %v692_v0 = vpop.f32.mrb[7].mxu1 }
 0x101   :  { %599 = vst [vmem:[%s926_s3] sm:$0xff] %v598_v57   ;;  %638 = vst [vmem:[%s926_s3 + $0x20] sm:$0xff] %v618_v58   ;;  %v381_v1 = vadd.f32 %v666_v59, %v881_v34  ;;  %v389_v2 = vadd.f32 %v690_v60, %v881_v34  ;;  %v669_v3 = vadd.f32 %v668_v63, %v667_v61 }
 0x102   :  { %v693_v4 = vadd.f32 %v692_v0, %v691_v62 }
 0x103   :  { %v382_v5 = vadd.f32 %v669_v3, %v881_v34  ;;  %v432_v7 = vmax.f32 %v381_v1, 0.0  ;;  %v440_v8 = vmax.f32 %v389_v2, 0.0 }
 0x104   :  { %v390_v6 = vadd.f32 %v693_v4, %v881_v34 }
 0x105   :  { %v433_v9 = vmax.f32 %v382_v5, 0.0  ;;  %v670_v11 = vpop.f32.mrb[8].mxu0  ;;  %v694_v12 = vpop.f32.mrb[8].mxu1 }
 0x106   :  { %v441_v10 = vmax.f32 %v390_v6, 0.0  ;;  %v671_v13 = vpop.f32.mrb[9].mxu0  ;;  %v695_v14 = vpop.f32.mrb[9].mxu1 }
 0x107   :  { %v603_v15 = vpack.c.bf16 %v433_v9, %v432_v7  ;;  %v672_v17 = vadd.f32 %v671_v13, %v670_v11  ;;  %v696_v18 = vadd.f32 %v695_v14, %v694_v12  ;;  %v673_v19 = vpop.f32.mrb[10].mxu0  ;;  %v697_v20 = vpop.f32.mrb[10].mxu1 }
 0x108   :  { %v623_v16 = vpack.c.bf16 %v441_v10, %v440_v8  ;;  %v674_v21 = vpop.f32.mrb[11].mxu0  ;;  %v698_v22 = vpop.f32.mrb[11].mxu1 }
 0x109   :  { %635 = vst [vmem:[%s926_s3 + $0x8] sm:$0xff] %v603_v15   ;;  %v383_v23 = vadd.f32 %v672_v17, %v881_v34  ;;  %v391_v24 = vadd.f32 %v696_v18, %v881_v34  ;;  %v675_v25 = vadd.f32 %v674_v21, %v673_v19  ;;  %v699_v26 = vadd.f32 %v698_v22, %v697_v20 }
 0x10a   :  { %639 = vst [vmem:[%s926_s3 + $0x28] sm:$0xff] %v623_v16  }
 0x10b   :  { %v384_v27 = vadd.f32 %v675_v25, %v881_v34  ;;  %v392_v28 = vadd.f32 %v699_v26, %v881_v34  ;;  %v434_v29 = vmax.f32 %v383_v23, 0.0  ;;  %v442_v30 = vmax.f32 %v391_v24, 0.0 }
 0x10d   :  { %v435_v31 = vmax.f32 %v384_v27, 0.0  ;;  %v443_v32 = vmax.f32 %v392_v28, 0.0  ;;  %v676_v33 = vpop.f32.mrb[12].mxu0  ;;  %v700_v35 = vpop.f32.mrb[12].mxu1 }
 0x10e   :  { %v677_v36 = vpop.f32.mrb[13].mxu0  ;;  %v701_v37 = vpop.f32.mrb[13].mxu1 }
 0x10f   :  { %v608_v38 = vpack.c.bf16 %v435_v31, %v434_v29  ;;  %v628_v39 = vpack.c.bf16 %v443_v32, %v442_v30  ;;  %v678_v40 = vadd.f32 %v677_v36, %v676_v33  ;;  %v702_v41 = vadd.f32 %v701_v37, %v700_v35  ;;  %v679_v42 = vpop.f32.mrb[14].mxu0  ;;  %v703_v43 = vpop.f32.mrb[14].mxu1 }
 0x110   :  { %v680_v44 = vpop.f32.mrb[15].mxu0  ;;  %v704_v45 = vpop.f32.mrb[15].mxu1 }
 0x111   :  { %636 = vst [vmem:[%s926_s3 + $0x10] sm:$0xff] %v608_v38   ;;  %640 = vst [vmem:[%s926_s3 + $0x30] sm:$0xff] %v628_v39   ;;  %v385_v46 = vadd.f32 %v678_v40, %v881_v34  ;;  %v393_v47 = vadd.f32 %v702_v41, %v881_v34  ;;  %v681_v48 = vadd.f32 %v680_v44, %v679_v42 }
 0x112   :  { %v705_v49 = vadd.f32 %v704_v45, %v703_v43 }
 0x113   :  { %v386_v50 = vadd.f32 %v681_v48, %v881_v34  ;;  %v436_v52 = vmax.f32 %v385_v46, 0.0  ;;  %v444_v53 = vmax.f32 %v393_v47, 0.0 }
 0x114   :  { %v394_v51 = vadd.f32 %v705_v49, %v881_v34 }
 0x115   :  { %v437_v54 = vmax.f32 %v386_v50, 0.0 }
 0x116   :  { %v445_v55 = vmax.f32 %v394_v51, 0.0 }
 0x117   :  { %v613_v56 = vpack.c.bf16 %v437_v54, %v436_v52 }
 0x118   :  { %v633_v57 = vpack.c.bf16 %v445_v55, %v444_v53 }
 0x119   :  { %637 = vst [vmem:[%s926_s3 + $0x18] sm:$0xff] %v613_v56  }
 0x11a   :  { %641 = vst [vmem:[%s926_s3 + $0x38] sm:$0xff] %v633_v57  }

// kernel: fwd.5
= control target key start
LH: loop header
LB: loop body
LE: loop exit
PB: predicated region body
PF: predicated region fallthrough
CT: control target
= control target key end

     0   :  { %s788_s1 = inlined_call_operand.vmem [shape: bf16[512,128], index: 1, kind: input, shape index: {}]   ;;  %s789_s0 = inlined_call_operand.vmem [shape: bf16[32,512], index: 0, kind: input, shape index: {}]   ;;  %s790_s2 = inlined_call_operand.vmem [shape: f32[1,128], index: 2, kind: input, shape index: {}]   ;;  %s791_s3 = inlined_call_operand.vmem [shape: bf16[32,128], index: 3, kind: output, shape index: {}]  }
   0x1   :  { %v595_v0 = vld [vmem:[%s788_s1 + $0x40] sm:$0xff]   ;;  %v599_v4 = vld [vmem:[%s788_s1 + $0x48] sm:$0xff]   ;;  %v603_v8 = vld [vmem:[%s788_s1 + $0x50] sm:$0xff]  }
   0x2   :  { %v596_v1 = vld [vmem:[%s788_s1 + $0xc0] sm:$0xff]   ;;  %539 = vmatprep.subr.bf16.mxu0 %v595_v0  ;;  %v600_v5 = vld [vmem:[%s788_s1 + $0xc8] sm:$0xff]   ;;  %v604_v9 = vld [vmem:[%s788_s1 + $0xd0] sm:$0xff]  }
   0x3   :  { %v597_v2 = vld [vmem:[%s788_s1] sm:$0xff]   ;;  %567 = vmatprep.subr.bf16.mxu1 %v596_v1  ;;  %v601_v6 = vld [vmem:[%s788_s1 + $0x8] sm:$0xff]   ;;  %v605_v10 = vld [vmem:[%s788_s1 + $0x10] sm:$0xff]  }
   0x4   :  { %v598_v3 = vld [vmem:[%s788_s1 + $0x80] sm:$0xff]   ;;  %540 = vmatpush3.bf16.msra.mxu0 %v597_v2  ;;  %v602_v7 = vld [vmem:[%s788_s1 + $0x88] sm:$0xff]   ;;  %v606_v11 = vld [vmem:[%s788_s1 + $0x90] sm:$0xff]  }
   0x5   :  { %568 = vmatpush3.bf16.msra.mxu1 %v598_v3  ;;  %541 = vmatprep.subr.bf16.mxu0 %v599_v4  ;;  %v607_v12 = vld [vmem:[%s788_s1 + $0x58] sm:$0xff]   ;;  %v611_v16 = vld [vmem:[%s788_s1 + $0x60] sm:$0xff]   ;;  %v615_v20 = vld [vmem:[%s788_s1 + $0x68] sm:$0xff]  }
   0x6   :  { %569 = vmatprep.subr.bf16.mxu1 %v600_v5  ;;  %v608_v13 = vld [vmem:[%s788_s1 + $0xd8] sm:$0xff]   ;;  %v612_v17 = vld [vmem:[%s788_s1 + $0xe0] sm:$0xff]   ;;  %v616_v21 = vld [vmem:[%s788_s1 + $0xe8] sm:$0xff]  }
   0x7   :  { %v609_v14 = vld [vmem:[%s788_s1 + $0x18] sm:$0xff]   ;;  %v613_v18 = vld [vmem:[%s788_s1 + $0x20] sm:$0xff]   ;;  %v617_v22 = vld [vmem:[%s788_s1 + $0x28] sm:$0xff]  }
   0x8   :  { %542 = vmatpush3.bf16.msra.mxu0 %v601_v6  ;;  %v610_v15 = vld [vmem:[%s788_s1 + $0x98] sm:$0xff]   ;;  %v614_v19 = vld [vmem:[%s788_s1 + $0xa0] sm:$0xff]   ;;  %v618_v23 = vld [vmem:[%s788_s1 + $0xa8] sm:$0xff]  }
   0x9   :  { %570 = vmatpush3.bf16.msra.mxu1 %v602_v7  ;;  %543 = vmatprep.subr.bf16.mxu0 %v603_v8  ;;  %v619_v24 = vld [vmem:[%s788_s1 + $0x70] sm:$0xff]   ;;  %v623_v28 = vld [vmem:[%s788_s1 + $0x78] sm:$0xff]   ;;  %v479_v49 = vld [vmem:[%s790_s2] ss:$0 sm:$0xff] }
   0xa   :  { %571 = vmatprep.subr.bf16.mxu1 %v604_v9  ;;  %v620_v25 = vld [vmem:[%s788_s1 + $0xf0] sm:$0xff]   ;;  %v624_v29 = vld [vmem:[%s788_s1 + $0xf8] sm:$0xff]  }
   0xb   :  { %v621_v26 = vld [vmem:[%s788_s1 + $0x30] sm:$0xff]   ;;  %v625_v30 = vld [vmem:[%s788_s1 + $0x38] sm:$0xff]  }
   0xc   :  { %544 = vmatpush3.bf16.msra.mxu0 %v605_v10  ;;  %v622_v27 = vld [vmem:[%s788_s1 + $0xb0] sm:$0xff]   ;;  %v626_v31 = vld [vmem:[%s788_s1 + $0xb8] sm:$0xff]  }
   0xd   :  { %572 = vmatpush3.bf16.msra.mxu1 %v606_v11  ;;  %545 = vmatprep.subr.bf16.mxu0 %v607_v12  ;;  %v627_v32 = vld [vmem:[%s789_s0] ss:$16 sps:$4 sm:$0xff]   ;;  %v629_v33 = vld [vmem:[%s789_s0 + $0x4] ss:$16 sps:$4 sm:$0xff]   ;;  %v630_v34 = vld [vmem:[%s789_s0 + $0x8] ss:$16 sps:$4 sm:$0xff]  }
   0xe   :  { %573 = vmatprep.subr.bf16.mxu1 %v608_v13  ;;  %v632_v35 = vld [vmem:[%s789_s0 + $0xc] ss:$16 sps:$4 sm:$0xff]   ;;  %370 = vmatprep.mubr.bf16.mxu0 %v629_v33  ;;  %v633_v36 = vld [vmem:[%s789_s0 + $0x24] ss:$16 sps:$4 sm:$0xff]   ;;  %v637_v38 = vld [vmem:[%s789_s0 + $0x20] ss:$16 sps:$4 sm:$0xff]  }
   0xf   :  { %419 = vmatprep.mubr.bf16.mxu1 %v632_v35  ;;  %v635_v37 = vld [vmem:[%s789_s0 + $0x2c] ss:$16 sps:$4 sm:$0xff]   ;;  %v638_v39 = vld [vmem:[%s789_s0 + $0x28] ss:$16 sps:$4 sm:$0xff]  }
  0x10   :  { %546 = vmatpush3.bf16.msra.mxu0 %v609_v14 }
  0x11   :  { %574 = vmatpush3.bf16.msra.mxu1 %v610_v15  ;;  %547 = vmatprep.subr.bf16.mxu0 %v611_v16 }
  0x12   :  { %575 = vmatprep.subr.bf16.mxu1 %v612_v17 }
  0x14   :  { %548 = vmatpush3.bf16.msra.mxu0 %v613_v18 }
  0x15   :  { %576 = vmatpush3.bf16.msra.mxu1 %v614_v19  ;;  %549 = vmatprep.subr.bf16.mxu0 %v615_v20 }
  0x16   :  { %577 = vmatprep.subr.bf16.mxu1 %v616_v21 }
  0x18   :  { %550 = vmatpush3.bf16.msra.mxu0 %v617_v22 }
  0x19   :  { %578 = vmatpush3.bf16.msra.mxu1 %v618_v23  ;;  %551 = vmatprep.subr.bf16.mxu0 %v619_v24 }
  0x1a   :  { %579 = vmatprep.subr.bf16.mxu1 %v620_v25 }
  0x1c   :  { %552 = vmatpush3.bf16.msra.mxu0 %v621_v26 }
  0x1d   :  { %580 = vmatpush3.bf16.msra.mxu1 %v622_v27  ;;  %553 = vmatprep.subr.bf16.mxu0 %v623_v28 }
  0x1e   :  { %581 = vmatprep.subr.bf16.mxu1 %v624_v29 }
  0x20   :  { %554 = vmatpush3.bf16.msra.mxu0 %v625_v30 }
  0x21   :  { %582 = vmatpush3.bf16.msra.mxu1 %v626_v31 }
  0x23   :  { %371 = vmatmul.mubr.bf16.vlgmr.msra.gmra.mrb[0].mxu0 %v627_v32 }
  0x24   :  { %420 = vmatmul.mubr.bf16.vlgmr.msra.gmra.mrb[0].mxu1 %v630_v34  ;;  %378 = vmatprep.mubr.bf16.mxu0 %v633_v36 }
  0x25   :  { %427 = vmatprep.mubr.bf16.mxu1 %v635_v37 }
  0x2b   :  { %379 = vmatmul.mubr.bf16.gmra.mrb[4].mxu0 %v637_v38 }
  0x2c   :  { %428 = vmatmul.mubr.bf16.gmra.mrb[4].mxu1 %v638_v39 }
  0xf6   :  { %v555_v40 = vpop.f32.mrb[0].mxu0 }
  0xf7   :  { %v583_v41 = vpop.f32.mrb[0].mxu1  ;;  %v556_v42 = vpop.f32.mrb[1].mxu0 }
  0xf8   :  { %v557_v43 = vadd.f32 %v556_v42, %v555_v40  ;;  %v584_v44 = vpop.f32.mrb[1].mxu1  ;;  %v558_v45 = vpop.f32.mrb[2].mxu0 }
  0xf9   :  { %v585_v46 = vadd.f32 %v584_v44, %v583_v41  ;;  %v586_v47 = vpop.f32.mrb[2].mxu1  ;;  %v559_v48 = vpop.f32.mrb[3].mxu0 }
  0xfa   :  { %v560_v50 = vadd.f32 %v559_v48, %v558_v45  ;;  %v587_v51 = vpop.f32.mrb[3].mxu1 }
  0xfb   :  { %v422_v52 = vadd.f32 %v585_v46, %v557_v43  ;;  %v588_v53 = vadd.f32 %v587_v51, %v586_v47 }
  0xfd   :  { %v436_v54 = vadd.f32 %v479_v49, %v422_v52  ;;  %v425_v55 = vadd.f32 %v588_v53, %v560_v50 }
  0xfe   :  { %v561_v56 = vpop.f32.mrb[4].mxu0 }
  0xff   :  { %v437_v57 = vadd.f32 %v479_v49, %v425_v55  ;;  %v589_v58 = vpop.f32.mrb[4].mxu1  ;;  %v562_v59 = vpop.f32.mrb[5].mxu0  ;;  %v451_v63 = vmax.f32 %v436_v54, 0.0 }
 0x100   :  { %v563_v60 = vadd.f32 %v562_v59, %v561_v56  ;;  %v590_v61 = vpop.f32.mrb[5].mxu1  ;;  %v564_v62 = vpop.f32.mrb[6].mxu0 }
 0x101   :  { %v452_v0 = vmax.f32 %v437_v57, 0.0  ;;  %v591_v1 = vadd.f32 %v590_v61, %v589_v58  ;;  %v592_v2 = vpop.f32.mrb[6].mxu1  ;;  %v565_v3 = vpop.f32.mrb[7].mxu0 }
 0x102   :  { %v566_v4 = vadd.f32 %v565_v3, %v564_v62  ;;  %v593_v5 = vpop.f32.mrb[7].mxu1 }
 0x103   :  { %v531_v6 = vpack.c.bf16 %v452_v0, %v451_v63  ;;  %v430_v7 = vadd.f32 %v591_v1, %v563_v60  ;;  %v594_v8 = vadd.f32 %v593_v5, %v592_v2 }
 0x105   :  { %532 = vst [vmem:[%s791_s3] sm:$0xff] %v531_v6   ;;  %v438_v9 = vadd.f32 %v479_v49, %v430_v7  ;;  %v433_v10 = vadd.f32 %v594_v8, %v566_v4 }
 0x107   :  { %v439_v11 = vadd.f32 %v479_v49, %v433_v10  ;;  %v453_v12 = vmax.f32 %v438_v9, 0.0 }
 0x109   :  { %v454_v13 = vmax.f32 %v439_v11, 0.0 }
 0x10b   :  { %v536_v14 = vpack.c.bf16 %v454_v13, %v453_v12 }
 0x10d   :  { %538 = vst [vmem:[%s791_s3 + $0x8] sm:$0xff] %v536_v14  }

// kernel: fwd.6
= control target key start
LH: loop header
LB: loop body
LE: loop exit
PB: predicated region body
PF: predicated region fallthrough
CT: control target
= control target key end

     0   :  { %s975_s12 = smov 0   ;;  %s977_s13 = smov 0   ;;  %s1079_s0 = inlined_call_operand.vmem [shape: bf16[16,768], index: 0, kind: input, shape index: {}]   ;;  %s1080_s1 = inlined_call_operand.vmem [shape: bf16[768,128], index: 1, kind: input, shape index: {}]   ;;  %s1081_s2 = inlined_call_operand.vmem [shape: f32[1,128], index: 2, kind: input, shape index: {}]   ;;  %s1082_s3 = inlined_call_operand.vmem [shape: bf16[16,128], index: 3, kind: output, shape index: {}]  }
   0x1   :  { %s979_s14 = smov 0   ;;  %s981_s15 = smov 0  }
   0x2   :  { %s983_s16 = smov 0  }
   0x3 LB: > { %s25_s17 = sadd.s32 1, %s947_s15  ;;  %p48_p1 = scmp.ne.s32.totalorder %s939_s13, %s935_s12  ;;  %s951_s16 = sphi %s983_s16, %s13_s16   ;;  %s947_s15 = sphi %s981_s15, %s1086_s15   ;;  %s943_s14 = sphi %s979_s14, %s1085_s14   ;;  %s939_s13 = sphi %s977_s13, %s1084_s13   ;;  %s935_s12 = sphi %s975_s12, %s1083_s12  }
   0x4   : > { %p26_p0 = scmp.ge.s32.totalorder %s25_s17, 2  ;;  %p49_p2 = scmp.eq.s32.totalorder %s951_s16, 0 }
   0x5   : > { %s41_s19 = sadd.s32 1, %s939_s13  ;;  %p738_p5 = scmp.ge.s32.totalorder %s951_s16, 2 }
   0x6   : > { %s1088_s17 = smov (%p26_p0, %s25_s17), 0  ;;  %p50_p3 = por %p49_p2, %p48_p1 }
   0x7   : > { %s37_s18 = ssub.s32 %s947_s15, %s1088_s17  ;;  %162 = sbr.rel (%p738_p5) target bundleno = 21 (0x15), region = 20 }
   0x8   : > { %p39_p4 = scmp.eq.s32.totalorder %s37_s18, 0 }
   0xa   : > { %s1010_s20 = scalar_select %p39_p4, %s939_s13, %s41_s19  }
   0xe   : > { %165 = sbr.rel (!%p50_p3) target bundleno = 21 (0x15), region = 24  ;;  %s167_s21 = sand.u32 (%p50_p3), 1, %s939_s13  }
   0xf   : > { %s782_s22 = smul.u32 (%p50_p3), 12, %s947_s15 }
  0x10   : > { %s841_s23 = smul.u32 (%p50_p3), 24, %s167_s21 }
  0x11   : > { %s175_s26 = scalar_lea.vmem (%p50_p3), %s1079_s0, %s782_s22 }
  0x12   : > { %v190_v0 = vld [vmem:[%s175_s26] sm:$0xff] (%p50_p3)  ;;  %v192_v1 = vld [vmem:[%s175_s26 + $0x18] sm:$0xff] (%p50_p3)  ;;  %v740_v2 = vld [vmem:[%s175_s26 + $0x8] sm:$0xf] (%p50_p3)  ;;  %s169_s27 = scalar_lea.vmem (%p50_p3), [#allocation3], %s841_s23 }
  0x13   : > { %191 = vst [vmem:[%s169_s27] sm:$0xff] (%p50_p3), %v190_v0  ;;  %193 = vst [vmem:[%s169_s27 + $0xc] sm:$0xff] (%p50_p3), %v192_v1  ;;  %v742_v3 = vld [vmem:[%s175_s26 + $0x20] sm:$0xf] (%p50_p3) }
  0x14   : > { %741 = vst [vmem:[%s169_s27 + $0x8] sm:$0xf] (%p50_p3), %v740_v2  ;;  %743 = vst [vmem:[%s169_s27 + $0x14] sm:$0xf] (%p50_p3), %v742_v3 }
  0x15 PF: > { %p744_p6 = scmp.ge.s32.totalorder %s951_s16, 1  ;;  %p221_p7 = scmp.lt.s32.totalorder %s951_s16, 3 }
  0x17   : > { %p222_p8 = pnand %p744_p6, %p221_p7 }
  0x18   : > { %s228_s28 = sand.u32 (!%p222_p8), 1, %s935_s12   ;;  %s267_s29 = smul.u32 (!%p222_p8), 48, %s943_s14 }
  0x19   : > { %225 = sbr.rel (%p222_p8) target bundleno = 306 (0x132), region = 54  ;;  %p746_p10 = scmp.ne.s32.totalorder (!%p222_p8), %s943_s14, 0 }
  0x1a   : > { %s842_s30 = smul.u32 (!%p222_p8), 24, %s228_s28  ;;  %p268_p9 = scmp.lt.s32.totalorder (!%p222_p8), %s267_s29, 95 }
  0x1c   : > { %s1027_s8 = scalar_lea.vmem (!%p222_p8), [#allocation3], %s842_s30 }
  0x20   : > { %s1090_s29 = smov (!%p268_p9, %s267_s29), 95  ;;  %292 = sbr.rel (%p746_p10) target bundleno = 39 (0x27), region = 62 }
  0x21   : > { %s745_s4 = sshll.u32 %s1090_s29, 2  ;;  %v747_v4 = vld [vmem:[%s1081_s2] ss:$0 sm:$0xff] (!%p746_p10) }
  0x22   : > { %s1025_s7 = scalar_lea.vmem %s1080_s1, %s745_s4  ;;  %300 = vst [vmem:[#allocation2] sm:$0xff] (!%p746_p10), %v747_v4  ;;  %301 = vst [vmem:[#allocation2 + $0x8] sm:$0xff] (!%p746_p10), %v747_v4 }
  0x27 PF: > { %v885_v5 = vld [vmem:[%s1025_s7 + $0x40] sm:$0xff]   ;;  %v953_v6 = vmov 0.0   ;;  %vm954_vm0 = vmmov 0   ;;  %v888_v9 = vld [vmem:[%s1025_s7 + $0x48] sm:$0xff]   ;;  %v891_v12 = vld [vmem:[%s1025_s7 + $0x50] sm:$0xff]   ;;  %p775_p11 = scmp.ne.s32.totalorder %s943_s14, 1 }
  0x28   : > { %821 = vmatprep.subr.bf16.mxu1 %v953_v6  ;;  %v886_v7 = vld [vmem:[%s1025_s7] sm:$0xff]   ;;  %790 = vmatprep.subr.bf16.mxu0 %v885_v5  ;;  %v889_v10 = vld [vmem:[%s1025_s7 + $0x8] sm:$0xff]   ;;  %v892_v13 = vld [vmem:[%s1025_s7 + $0x10] sm:$0xff]  }
  0x29   : > { %v887_v8 = vld [vmem:[%s1025_s7 + $0x80] sm:$0xff]   ;;  %837 = vmatprep.mubr.msk.bf16.mxu1 %vm954_vm0, %v953_v6  ;;  %791 = vmatpush3.bf16.msra.mxu0 %v886_v7  ;;  %v890_v11 = vld [vmem:[%s1025_s7 + $0x88] sm:$0xff]   ;;  %v893_v14 = vld [vmem:[%s1025_s7 + $0x90] sm:$0xff]  }
  0x2a   : > { %822 = vmatpush3.bf16.msra.mxu1 %v887_v8  ;;  %792 = vmatprep.subr.bf16.mxu0 %v888_v9  ;;  %v894_v15 = vld [vmem:[%s1025_s7 + $0x58] sm:$0xff]   ;;  %v897_v18 = vld [vmem:[%s1025_s7 + $0x60] sm:$0xff]   ;;  %v900_v21 = vld [vmem:[%s1025_s7 + $0x68] sm:$0xff]  }
  0x2b   : > { %823 = vmatprep.subr.bf16.mxu1 %v953_v6  ;;  %v895_v16 = vld [vmem:[%s1025_s7 + $0x18] sm:$0xff]   ;;  %v898_v19 = vld [vmem:[%s1025_s7 + $0x20] sm:$0xff]   ;;  %v901_v22 = vld [vmem:[%s1025_s7 + $0x28] sm:$0xff]  }
  0x2c   : > { %v896_v17 = vld [vmem:[%s1025_s7 + $0x98] sm:$0xff]   ;;  %v899_v20 = vld [vmem:[%s1025_s7 + $0xa0] sm:$0xff]   ;;  %v902_v23 = vld [vmem:[%s1025_s7 + $0xa8] sm:$0xff]  }
  0x2d   : > { %793 = vmatpush3.bf16.msra.mxu0 %v889_v10  ;;  %v903_v24 = vld [vmem:[%s1025_s7 + $0x70] sm:$0xff]   ;;  %v906_v27 = vld [vmem:[%s1025_s7 + $0x78] sm:$0xff]   ;;  %v302_v39 = vld [vmem:[#allocation2] sm:$0xff] }
  0x2e   : > { %824 = vmatpush3.bf16.msra.mxu1 %v890_v11  ;;  %794 = vmatprep.subr.bf16.mxu0 %v891_v12  ;;  %v904_v25 = vld [vmem:[%s1025_s7 + $0x30] sm:$0xff]   ;;  %v907_v29 = vld [vmem:[%s1025_s7 + $0x38] sm:$0xff]   ;;  %v303_v45 = vld [vmem:[#allocation2 + $0x8] sm:$0xff] }
  0x2f   : > { %825 = vmatprep.subr.bf16.mxu1 %v953_v6  ;;  %v905_v26 = vld [vmem:[%s1025_s7 + $0xb0] sm:$0xff]   ;;  %v908_v30 = vld [vmem:[%s1025_s7 + $0xb8] sm:$0xff]  }
  0x30   : > { %v911_v28 = vld [vmem:[%s1027_s8 + $0x4] ss:$12 sps:$4 sm:$0xff]   ;;  %v909_v31 = vld [vmem:[%s1027_s8] ss:$12 sps:$4 sm:$0xff]   ;;  %v912_v32 = vld [vmem:[%s1027_s8 + $0x8] ss:$12 sps:$4 sm:$0xff]  }
  0x31   : > { %795 = vmatpush3.bf16.msra.mxu0 %v892_v13  ;;  %548 = vmatprep.mubr.bf16.mxu0 %v911_v28 }
  0x32   : > { %826 = vmatpush3.bf16.msra.mxu1 %v893_v14  ;;  %796 = vmatprep.subr.bf16.mxu0 %v894_v15 }
  0x33   : > { %827 = vmatprep.subr.bf16.mxu1 %v953_v6 }
  0x35   : > { %797 = vmatpush3.bf16.msra.mxu0 %v895_v16 }
  0x36   : > { %828 = vmatpush3.bf16.msra.mxu1 %v896_v17  ;;  %798 = vmatprep.subr.bf16.mxu0 %v897_v18 }
  0x37   : > { %829 = vmatprep.subr.bf16.mxu1 %v953_v6 }
  0x39   : > { %799 = vmatpush3.bf16.msra.mxu0 %v898_v19 }
  0x3a   : > { %830 = vmatpush3.bf16.msra.mxu1 %v899_v20  ;;  %800 = vmatprep.subr.bf16.mxu0 %v900_v21 }
  0x3b   : > { %831 = vmatprep.subr.bf16.mxu1 %v953_v6 }
  0x3d   : > { %801 = vmatpush3.bf16.msra.mxu0 %v901_v22 }
  0x3e   : > { %832 = vmatpush3.bf16.msra.mxu1 %v902_v23  ;;  %802 = vmatprep.subr.bf16.mxu0 %v903_v24 }
  0x3f   : > { %833 = vmatprep.subr.bf16.mxu1 %v953_v6 }
  0x41   : > { %803 = vmatpush3.bf16.msra.mxu0 %v904_v25 }
  0x42   : > { %834 = vmatpush3.bf16.msra.mxu1 %v905_v26  ;;  %804 = vmatprep.subr.bf16.mxu0 %v906_v27 }
  0x43   : > { %835 = vmatprep.subr.bf16.mxu1 %v953_v6 }
  0x45   : > { %805 = vmatpush3.bf16.msra.mxu0 %v907_v29 }
  0x46   : > { %836 = vmatpush3.bf16.msra.mxu1 %v908_v30 }
  0x48   : > { %549 = vmatmul.mubr.bf16.vlgmr.msra.gmra.mrb[0].mxu0 %v909_v31 }
  0x49   : > { %838 = vmatmul.mubr.bf16.vlgmr.msra.gmra.mrb[0].mxu1 %v912_v32 }
 0x11b   : > { %v806_v33 = vpop.f32.mrb[0].mxu0 }
 0x11c   : > { %v591_v34 = vpop.f32.mrb[0].mxu1  ;;  %v807_v35 = vpop.f32.mrb[1].mxu0 }
 0x11d   : > { %v808_v36 = vadd.f32 %v807_v35, %v806_v33  ;;  %v839_v37 = vpop.f32.mrb[1].mxu1  ;;  %v809_v38 = vpop.f32.mrb[2].mxu0 }
 0x11e   : > { %v594_v40 = vpop.f32.mrb[2].mxu1  ;;  %v810_v41 = vpop.f32.mrb[3].mxu0 }
 0x11f   : > { %v592_v42 = vadd.f32 %v808_v36, %v591_v34  ;;  %v811_v43 = vadd.f32 %v810_v41, %v809_v38  ;;  %v840_v44 = vpop.f32.mrb[3].mxu1  ;;  %605 = sbr.rel (%p775_p11) target bundleno = 306 (0x132), region = 66 }
 0x121   : > { %v598_v46 = vadd.f32 %v592_v42, %v302_v39  ;;  %v595_v47 = vadd.f32 %v811_v43, %v594_v40 }
 0x123   : > { %600 = vst [vmem:[#allocation2] sm:$0xff] %v598_v46  ;;  %v599_v48 = vadd.f32 %v595_v47, %v303_v45 }
 0x125   : > { %601 = vst [vmem:[#allocation2 + $0x8] sm:$0xff] %v599_v48 }
 0x12a   : > { %v606_v49 = vld [vmem:[#allocation2] sm:$0xff] }
 0x12b   : > { %v608_v51 = vmax.f32 %v606_v49, 0.0 }
 0x12c   : > { %v607_v50 = vld [vmem:[#allocation2 + $0x8] sm:$0xff] }
 0x12d   : > { %v609_v52 = vmax.f32 %v607_v50, 0.0 }
 0x12f   : > { %v788_v53 = vpack.c.bf16 %v609_v52, %v608_v51 }
 0x131   : > { %789 = vst [vmem:[%s1082_s3] sm:$0xff] %v788_v53  }
 0x132 PF: > { %s13_s16 = sadd.s32 1, %s951_s16   ;;  %s1083_s12 = smov %s939_s13 }
 0x133   : > { %p10_p12 = scmp.ge.s32.totalorder %s13_s16, 4   ;;  %s1084_s13 = smov %s1010_s20 }
 0x134   : > { %s1085_s14 = smov %s947_s15  ;;  %s1086_s15 = smov %s1088_s17 }
 0x135   :  { %12 = sbr.rel (!%p10_p12) target bundleno = 3 (0x3), region = 113 }

// kernel: fwd.7
= control target key start
LH: loop header
LB: loop body
LE: loop exit
PB: predicated region body
PF: predicated region fallthrough
CT: control target
= control target key end

     0   :  { %v931_v1 = vmov 0   ;;  %s1169_s1 = inlined_call_operand.vmem [shape: bf16[128,512], index: 1, kind: input, shape index: {}]   ;;  %s1170_s0 = inlined_call_operand.vmem [shape: bf16[16,128], index: 0, kind: input, shape index: {}]   ;;  %s1171_s3 = inlined_call_operand.vmem [shape: bf16[512,128], index: 3, kind: input, shape index: {}]   ;;  %s1172_s2 = inlined_call_operand.vmem [shape: f32[1,512], index: 2, kind: input, shape index: {}]   ;;  %s1173_s4 = inlined_call_operand.vmem [shape: f32[1,128], index: 4, kind: input, shape index: {}]   ;;  %s1174_s5 = inlined_call_operand.vmem [shape: f32[16,128], index: 5, kind: output, shape index: {}]  }
   0x1   :  { %v850_v0 = vld [vmem:[%s1169_s1 + $0x4] ss:$16 sps:$4 sm:$0xff]   ;;  %295 = vmatprep.mubr.bf16.mxu0 %v931_v1  ;;  %338 = vmatprep.mubr.bf16.mxu1 %v931_v1  ;;  %v852_v2 = vld [vmem:[%s1169_s1 + $0xc] ss:$16 sps:$4 sm:$0xff]   ;;  %v854_v3 = vld [vmem:[%s1169_s1] ss:$16 sps:$4 sm:$0xff]  }
   0x2   :  { %263 = vmatprep.subr.bf16.mxu0 %v850_v0  ;;  %v855_v4 = vld [vmem:[%s1169_s1 + $0x8] ss:$16 sps:$4 sm:$0xff]   ;;  %306 = vmatprep.subr.bf16.mxu1 %v852_v2  ;;  %v856_v5 = vld [vmem:[%s1169_s1 + $0x24] ss:$16 sps:$4 sm:$0xff]   ;;  %v858_v6 = vld [vmem:[%s1169_s1 + $0x2c] ss:$16 sps:$4 sm:$0xff]   ;;  %v27_v2 = vlaneseq }
   0x3   :  { %264 = vmatpush1.bf16.msra.mxu0 %v854_v3  ;;  %307 = vmatpush1.bf16.msra.mxu1 %v855_v4  ;;  %v860_v7 = vld [vmem:[%s1169_s1 + $0x20] ss:$16 sps:$4 sm:$0xff]   ;;  %v861_v8 = vld [vmem:[%s1169_s1 + $0x28] ss:$16 sps:$4 sm:$0xff]   ;;  %v862_v9 = vld [vmem:[%s1169_s1 + $0x44] ss:$16 sps:$4 sm:$0xff]  }
   0x4   :  { %265 = vmatprep.subr.bf16.mxu0 %v856_v5  ;;  %308 = vmatprep.subr.bf16.mxu1 %v858_v6  ;;  %v864_v10 = vld [vmem:[%s1169_s1 + $0x4c] ss:$16 sps:$4 sm:$0xff]   ;;  %v866_v11 = vld [vmem:[%s1169_s1 + $0x40] ss:$16 sps:$4 sm:$0xff]   ;;  %v867_v12 = vld [vmem:[%s1169_s1 + $0x48] ss:$16 sps:$4 sm:$0xff]  }
   0x5   :  { %v868_v13 = vld [vmem:[%s1169_s1 + $0x64] ss:$16 sps:$4 sm:$0xff]   ;;  %v870_v14 = vld [vmem:[%s1169_s1 + $0x6c] ss:$16 sps:$4 sm:$0xff]   ;;  %v872_v15 = vld [vmem:[%s1169_s1 + $0x60] ss:$16 sps:$4 sm:$0xff]  }
   0x6   :  { %v873_v16 = vld [vmem:[%s1169_s1 + $0x68] ss:$16 sps:$4 sm:$0xff]   ;;  %v874_v17 = vld [vmem:[%s1169_s1 + $0x84] ss:$16 sps:$4 sm:$0xff]   ;;  %v876_v18 = vld [vmem:[%s1169_s1 + $0x8c] ss:$16 sps:$4 sm:$0xff]  }
   0x7   :  { %266 = vmatpush1.bf16.msra.mxu0 %v860_v7  ;;  %309 = vmatpush1.bf16.msra.mxu1 %v861_v8  ;;  %v878_v19 = vld [vmem:[%s1169_s1 + $0x80] ss:$16 sps:$4 sm:$0xff]   ;;  %v879_v20 = vld [vmem:[%s1169_s1 + $0x88] ss:$16 sps:$4 sm:$0xff]   ;;  %v880_v21 = vld [vmem:[%s1169_s1 + $0xa4] ss:$16 sps:$4 sm:$0xff]  }
   0x8   :  { %267 = vmatprep.subr.bf16.mxu0 %v862_v9  ;;  %310 = vmatprep.subr.bf16.mxu1 %v864_v10  ;;  %v882_v22 = vld [vmem:[%s1169_s1 + $0xac] ss:$16 sps:$4 sm:$0xff]   ;;  %v884_v23 = vld [vmem:[%s1169_s1 + $0xa0] ss:$16 sps:$4 sm:$0xff]   ;;  %v885_v24 = vld [vmem:[%s1169_s1 + $0xa8] ss:$16 sps:$4 sm:$0xff]  }
   0x9   :  { %v886_v25 = vld [vmem:[%s1169_s1 + $0xc4] ss:$16 sps:$4 sm:$0xff]   ;;  %v888_v26 = vld [vmem:[%s1169_s1 + $0xcc] ss:$16 sps:$4 sm:$0xff]   ;;  %v890_v27 = vld [vmem:[%s1169_s1 + $0xc0] ss:$16 sps:$4 sm:$0xff]  }
   0xa   :  { %v891_v28 = vld [vmem:[%s1169_s1 + $0xc8] ss:$16 sps:$4 sm:$0xff]   ;;  %v892_v29 = vld [vmem:[%s1169_s1 + $0xe4] ss:$16 sps:$4 sm:$0xff]   ;;  %v894_v30 = vld [vmem:[%s1169_s1 + $0xec] ss:$16 sps:$4 sm:$0xff]  }
   0xb   :  { %268 = vmatpush1.bf16.msra.mxu0 %v866_v11  ;;  %311 = vmatpush1.bf16.msra.mxu1 %v867_v12  ;;  %v896_v31 = vld [vmem:[%s1169_s1 + $0xe0] ss:$16 sps:$4 sm:$0xff]   ;;  %v897_v32 = vld [vmem:[%s1169_s1 + $0xe8] ss:$16 sps:$4 sm:$0xff]   ;;  %v28_v3 = vshrl.u32 %v27_v2, 7 }
   0xc   :  { %269 = vmatprep.subr.bf16.mxu0 %v868_v13  ;;  %312 = vmatprep.subr.bf16.mxu1 %v870_v14  ;;  %v899_v33 = vld [vmem:[%s1171_s3 + $0x40] sm:$0xff]   ;;  %v903_v38 = vld [vmem:[%s1171_s3 + $0x48] sm:$0xff]   ;;  %v907_v42 = vld [vmem:[%s1171_s3 + $0x50] sm:$0xff]  }
   0xd   :  { %v898_v34 = vld [vmem:[%s1170_s0] sm:$0xff]   ;;  %v904_v39 = vld [vmem:[%s1171_s3 + $0xc8] sm:$0xff]   ;;  %v908_v43 = vld [vmem:[%s1171_s3 + $0xd0] sm:$0xff]   ;;  %v29_v4 = vsub.s32 0, %v28_v3  ;;  %v37_v5 = vsub.s32 2, %v28_v3  ;;  %v33_v7 = vsub.s32 1, %v28_v3 }
   0xe   :  { %v900_v35 = vld [vmem:[%s1171_s3 + $0xc0] sm:$0xff]   ;;  %v905_v40 = vld [vmem:[%s1171_s3 + $0x8] sm:$0xff]   ;;  %v909_v44 = vld [vmem:[%s1171_s3 + $0x10] sm:$0xff]   ;;  %v41_v8 = vsub.s32 3, %v28_v3 }
   0xf   :  { %270 = vmatpush1.bf16.msra.mxu0 %v872_v15  ;;  %313 = vmatpush1.bf16.msra.mxu1 %v873_v16  ;;  %v901_v36 = vld [vmem:[%s1171_s3] sm:$0xff]   ;;  %v906_v41 = vld [vmem:[%s1171_s3 + $0x88] sm:$0xff]   ;;  %v910_v45 = vld [vmem:[%s1171_s3 + $0x90] sm:$0xff]  }
  0x10   :  { %271 = vmatprep.subr.bf16.mxu0 %v874_v17  ;;  %314 = vmatprep.subr.bf16.mxu1 %v876_v18  ;;  %v902_v37 = vld [vmem:[%s1171_s3 + $0x80] sm:$0xff]   ;;  %v911_v46 = vld [vmem:[%s1171_s3 + $0x58] sm:$0xff]   ;;  %v919_v54 = vld [vmem:[%s1171_s3 + $0x68] sm:$0xff]  }
  0x11   :  { %v912_v47 = vld [vmem:[%s1171_s3 + $0xd8] sm:$0xff]   ;;  %v915_v50 = vld [vmem:[%s1171_s3 + $0x60] sm:$0xff]   ;;  %v920_v55 = vld [vmem:[%s1171_s3 + $0xe8] sm:$0xff]  }
  0x12   :  { %v913_v48 = vld [vmem:[%s1171_s3 + $0x18] sm:$0xff]   ;;  %v916_v51 = vld [vmem:[%s1171_s3 + $0xe0] sm:$0xff]   ;;  %v921_v56 = vld [vmem:[%s1171_s3 + $0x28] sm:$0xff]  }
  0x13   :  { %272 = vmatpush1.bf16.msra.mxu0 %v878_v19  ;;  %315 = vmatpush1.bf16.msra.mxu1 %v879_v20  ;;  %v914_v49 = vld [vmem:[%s1171_s3 + $0x98] sm:$0xff]   ;;  %v917_v52 = vld [vmem:[%s1171_s3 + $0x20] sm:$0xff]   ;;  %v922_v57 = vld [vmem:[%s1171_s3 + $0xa8] sm:$0xff]  }
  0x14   :  { %273 = vmatprep.subr.bf16.mxu0 %v880_v21  ;;  %316 = vmatprep.subr.bf16.mxu1 %v882_v22  ;;  %v918_v53 = vld [vmem:[%s1171_s3 + $0xa0] sm:$0xff]   ;;  %v923_v58 = vld [vmem:[%s1171_s3 + $0x70] sm:$0xff]   ;;  %v927_v62 = vld [vmem:[%s1171_s3 + $0x78] sm:$0xff]  }
  0x15   :  { %v924_v59 = vld [vmem:[%s1171_s3 + $0xf0] sm:$0xff]   ;;  %v928_v63 = vld [vmem:[%s1171_s3 + $0xf8] sm:$0xff]   ;;  %v25_v6 = vld [vmem:[%s1172_s2] sm:$0xf] }
  0x16   :  { %v925_v60 = vld [vmem:[%s1171_s3 + $0x30] sm:$0xff]   ;;  %v929_v0 = vld [vmem:[%s1171_s3 + $0x38] sm:$0xff]   ;;  %v30_v9 = vrot.slane %v25_v6, %v29_v4  ;;  %v38_v10 = vrot.slane %v25_v6, %v37_v5  ;;  %v34_v11 = vrot.slane %v25_v6, %v33_v7  ;;  %v42_v12 = vrot.slane %v25_v6, %v41_v8 }
  0x17   :  { %274 = vmatpush1.bf16.msra.mxu0 %v884_v23  ;;  %317 = vmatpush1.bf16.msra.mxu1 %v885_v24  ;;  %v926_v61 = vld [vmem:[%s1171_s3 + $0xb0] sm:$0xff]   ;;  %v930_v1 = vld [vmem:[%s1171_s3 + $0xb8] sm:$0xff]  }
  0x18   :  { %275 = vmatprep.subr.bf16.mxu0 %v886_v25  ;;  %318 = vmatprep.subr.bf16.mxu1 %v888_v26 }
  0x1b   :  { %276 = vmatpush1.bf16.msra.mxu0 %v890_v27  ;;  %319 = vmatpush1.bf16.msra.mxu1 %v891_v28 }
  0x1c   :  { %277 = vmatprep.subr.bf16.mxu0 %v892_v29  ;;  %320 = vmatprep.subr.bf16.mxu1 %v894_v30 }
  0x1f   :  { %278 = vmatpush1.bf16.msra.mxu0 %v896_v31  ;;  %321 = vmatpush1.bf16.msra.mxu1 %v897_v32 }
  0x20   :  { %805 = vmatprep.subr.bf16.mxu0 %v899_v33  ;;  %827 = vmatprep.subr.bf16.mxu1 %v900_v35 }
  0x22   :  { %296 = vmatmul.mubr.bf16.vlgmr.msra.gmra.mrb[0].mxu0 %v898_v34  ;;  %339 = vmatmul.mubr.bf16.vlgmr.msra.gmra.mrb[0].mxu1 %v898_v34 }
  0x23   :  { %806 = vmatpush3.bf16.msra.mxu0 %v901_v36  ;;  %828 = vmatpush3.bf16.msra.mxu1 %v902_v37 }
  0x24   :  { %807 = vmatprep.subr.bf16.mxu0 %v903_v38  ;;  %829 = vmatprep.subr.bf16.mxu1 %v904_v39 }
  0x27   :  { %808 = vmatpush3.bf16.msra.mxu0 %v905_v40  ;;  %830 = vmatpush3.bf16.msra.mxu1 %v906_v41 }
  0x28   :  { %809 = vmatprep.subr.bf16.mxu0 %v907_v42  ;;  %831 = vmatprep.subr.bf16.mxu1 %v908_v43  ;;  %v772_v43 = vld [vmem:[%s1173_s4] ss:$0 sm:$0xff] }
  0x2b   :  { %810 = vmatpush3.bf16.msra.mxu0 %v909_v44  ;;  %832 = vmatpush3.bf16.msra.mxu1 %v910_v45 }
  0x2c   :  { %811 = vmatprep.subr.bf16.mxu0 %v911_v46  ;;  %833 = vmatprep.subr.bf16.mxu1 %v912_v47 }
  0x2f   :  { %812 = vmatpush3.bf16.msra.mxu0 %v913_v48  ;;  %834 = vmatpush3.bf16.msra.mxu1 %v914_v49 }
  0x30   :  { %813 = vmatprep.subr.bf16.mxu0 %v915_v50  ;;  %835 = vmatprep.subr.bf16.mxu1 %v916_v51 }
  0x33   :  { %814 = vmatpush3.bf16.msra.mxu0 %v917_v52  ;;  %836 = vmatpush3.bf16.msra.mxu1 %v918_v53 }
  0x34   :  { %815 = vmatprep.subr.bf16.mxu0 %v919_v54  ;;  %837 = vmatprep.subr.bf16.mxu1 %v920_v55 }
  0x37   :  { %816 = vmatpush3.bf16.msra.mxu0 %v921_v56  ;;  %838 = vmatpush3.bf16.msra.mxu1 %v922_v57 }
  0x38   :  { %817 = vmatprep.subr.bf16.mxu0 %v923_v58  ;;  %839 = vmatprep.subr.bf16.mxu1 %v924_v59 }
  0x3b   :  { %818 = vmatpush3.bf16.msra.mxu0 %v925_v60  ;;  %840 = vmatpush3.bf16.msra.mxu1 %v926_v61 }
  0x3c   :  { %819 = vmatprep.subr.bf16.mxu0 %v927_v62  ;;  %841 = vmatprep.subr.bf16.mxu1 %v928_v63 }
  0x3f   :  { %820 = vmatpush3.bf16.msra.mxu0 %v929_v0  ;;  %842 = vmatpush3.bf16.msra.mxu1 %v930_v1 }
  0xf5   :  { %v297_v13 = vpop.f32.mrb[0].mxu0  ;;  %v340_v14 = vpop.f32.mrb[0].mxu1 }
  0xf6   :  { %v349_v15 = vadd.f32 %v297_v13, %v30_v9  ;;  %v351_v16 = vadd.f32 %v340_v14, %v38_v10  ;;  %v299_v17 = vpop.f32.mrb[1].mxu0  ;;  %v342_v18 = vpop.f32.mrb[1].mxu1 }
  0xf7   :  { %v350_v19 = vadd.f32 %v299_v17, %v34_v11  ;;  %v352_v20 = vadd.f32 %v342_v18, %v42_v12  ;;  %v301_v21 = vpop.f32.mrb[2].mxu0  ;;  %v344_v22 = vpop.f32.mrb[2].mxu1 }
  0xf8   :  { %v378_v23 = vmax.f32 %v351_v16, 0.0  ;;  %v353_v24 = vadd.f32 %v301_v21, %v30_v9  ;;  %v355_v25 = vadd.f32 %v344_v22, %v38_v10  ;;  %v303_v26 = vpop.f32.mrb[3].mxu0  ;;  %v346_v27 = vpop.f32.mrb[3].mxu1  ;;  %v376_v31 = vmax.f32 %v349_v15, 0.0 }
  0xf9   :  { %v379_v28 = vmax.f32 %v352_v20, 0.0  ;;  %v354_v29 = vadd.f32 %v303_v26, %v34_v11  ;;  %v356_v30 = vadd.f32 %v346_v27, %v42_v12  ;;  %v377_v34 = vmax.f32 %v350_v19, 0.0 }
  0xfa   :  { %v380_v32 = vmax.f32 %v353_v24, 0.0  ;;  %v382_v33 = vmax.f32 %v355_v25, 0.0 }
  0xfb   :  { %v381_v35 = vmax.f32 %v354_v29, 0.0  ;;  %v383_v36 = vmax.f32 %v356_v30, 0.0 }
  0xfc   :  { %v384_v37 = vpack.c.bf16 %v380_v32, %v376_v31  ;;  %v386_v38 = vpack.c.bf16 %v382_v33, %v378_v23 }
  0xfd   :  { %v385_v39 = vpack.c.bf16 %v381_v35, %v377_v34  ;;  %v387_v40 = vpack.c.bf16 %v383_v36, %v379_v28 }
  0xff   :  { %683 = vmatprep.mubr.bf16.mxu0 %v385_v39  ;;  %724 = vmatprep.mubr.bf16.mxu1 %v387_v40 }
 0x100   :  { %684 = vmatmul.mubr.bf16.vlgmr.msra.gmra.mrb[4].mxu0 %v384_v37  ;;  %725 = vmatmul.mubr.bf16.vlgmr.msra.gmra.mrb[4].mxu1 %v386_v38 }
 0x1d3   :  { %v821_v41 = vpop.f32.mrb[4].mxu0  ;;  %v843_v42 = vpop.f32.mrb[4].mxu1 }
 0x1d4   :  { %v822_v44 = vpop.f32.mrb[5].mxu0  ;;  %v844_v45 = vpop.f32.mrb[5].mxu1 }
 0x1d5   :  { %v823_v46 = vadd.f32 %v822_v44, %v821_v41  ;;  %v845_v47 = vadd.f32 %v844_v45, %v843_v42  ;;  %v824_v48 = vpop.f32.mrb[6].mxu0  ;;  %v846_v49 = vpop.f32.mrb[6].mxu1 }
 0x1d6   :  { %v825_v50 = vpop.f32.mrb[7].mxu0  ;;  %v847_v51 = vpop.f32.mrb[7].mxu1 }
 0x1d7   :  { %v686_v52 = vadd.f32 %v823_v46, %v772_v43  ;;  %v826_v53 = vadd.f32 %v825_v50, %v824_v48  ;;  %v848_v54 = vadd.f32 %v847_v51, %v846_v49 }
 0x1d9   :  { %v727_v55 = vadd.f32 %v845_v47, %v686_v52  ;;  %v689_v56 = vadd.f32 %v826_v53, %v772_v43 }
 0x1db   :  { %733 = vst [vmem:[%s1174_s5] sm:$0xff] %v727_v55  ;;  %v730_v57 = vadd.f32 %v848_v54, %v689_v56 }
 0x1dd   :  { %734 = vst [vmem:[%s1174_s5 + $0x8] sm:$0xff] %v730_v57 }

</bundles_post_ra>
